<compile_context>
chip_gen: v6e
topology: v6e:2x2x1
jax: 0.10.0
libtpu: 0.0.40
codegen_flags: <defaults>
</compile_context>

<pallas_src>
import jax
import jax.numpy as jnp
from jax import lax
from jax.experimental import pallas as pl
from jax.experimental.pallas import tpu as pltpu

BN_EPS = 1e-5
CONV_CHANNELS = (32, 64, 128, 256)


# --------------------------------------------------------------------------
# Fused Pallas kernel: 4 conv blocks + global pooling + MLP head
# --------------------------------------------------------------------------
def fused_cnn_kernel(x_ref,
                     cw1, cs1, cw2, cs2, cw3, cs3, cw4, cs4,
                     fw1, fb1, fw2, fb2, fw3, fb3,
                     o_ref,
                     hp2, hp3, hp4, h4):
    """x_ref: (bt, L0, 3*C0) f32 host-side im2col'd input (channels-last).
    cw1: (3*C0, 32) bf16 im2col conv-1 weight (BN scale folded in).
    cw2..cw4: (3, cin, cout) bf16 per-tap conv weights (BN scale folded in).
    cs*: (1, cout) f32 folded conv-bias + BN shift.
    fw*: (din, dout) bf16 MLP weights; fb*: (1, dout) f32 biases (fc3 lane-padded).
    hp2..hp4: (bt, L+2, cin) f32 VMEM scratch, zero-padded conv inputs of blocks 2-4.
    h4: (bt, L0//16, 256) f32 VMEM scratch, block-4 output (global-pool input).
    o_ref: (bt, 1, 128-padded) f32 lane-dense logits slab.
    """
    bt, L0, _ = x_ref.shape

    # Zero ONLY the two boundary rows of each padded scratch (interior is fully
    # rewritten every step).  Done unconditionally (2 rows/block, negligible) so
    # it remains correct when the parallel grid axis is sharded across v7x's
    # 2 TensorCores (where program_id(0)==0 never runs on the second core).
    for hp in (hp2, hp3, hp4):
        cin = hp.shape[2]
        last = hp.shape[1] - 1
        zrow = jnp.zeros((bt, 1, cin), jnp.float32)
        hp[:, 0:1, :] = zrow
        hp[:, last:last + 1, :] = zrow

    # ---- Block 1: Conv1d(k=3,pad=1) as one MXU matmul over im2col'd input ----
    c1 = cw1.shape[-1]
    lhs = x_ref[...].reshape(bt * L0, x_ref.shape[2]).astype(jnp.bfloat16)
    acc = jnp.dot(lhs, cw1[...], preferred_element_type=jnp.float32) + cs1[...]
    acc = jnp.maximum(acc, 0.0)                                  # ReLU; dropout = identity
    pooled = jnp.max(acc.reshape(bt * L0 // 2, 2, c1), axis=1)   # MaxPool1d(2)
    hp2[:, 1:1 + L0 // 2, :] = pooled.reshape(bt, L0 // 2, c1)

    # ---- Blocks 2-4: Conv1d as 3 per-tap matmuls accumulated in f32 ----------
    def conv_block(hp_ref, w_ref, s_ref):
        btb, lp2, cin = hp_ref.shape
        L = lp2 - 2
        cout = w_ref.shape[-1]
        a = jnp.dot(hp_ref[:, 0:L, :].reshape(btb * L, cin).astype(jnp.bfloat16),
                    w_ref[0], preferred_element_type=jnp.float32)
        a += jnp.dot(hp_ref[:, 1:1 + L, :].reshape(btb * L, cin).astype(jnp.bfloat16),
                     w_ref[1], preferred_element_type=jnp.float32)
        a += jnp.dot(hp_ref[:, 2:2 + L, :].reshape(btb * L, cin).astype(jnp.bfloat16),
                     w_ref[2], preferred_element_type=jnp.float32)
        a = jnp.maximum(a + s_ref[...], 0.0)                     # folded bias+BN, ReLU
        p = jnp.max(a.reshape(btb * L // 2, 2, cout), axis=1)    # MaxPool1d(2)
        return p.reshape(btb, L // 2, cout)

    h2 = conv_block(hp2, cw2, cs2)                               # (bt, L0//4, 64)
    hp3[:, 1:1 + h2.shape[1], :] = h2
    h3 = conv_block(hp3, cw3, cs3)                               # (bt, L0//8, 128)
    hp4[:, 1:1 + h3.shape[1], :] = h3
    h4[...] = conv_block(hp4, cw4, cs4)                          # (bt, L0//16, 256)

    # ---- Head: global avg + max pooling over length, concat, 3-layer MLP -----
    h = h4[...]
    avg = jnp.mean(h, axis=1)                                    # AdaptiveAvgPool1d(1)
    mx = jnp.max(h, axis=1)                                      # AdaptiveMaxPool1d(1)
    combined = jnp.concatenate([avg, mx], axis=1).astype(jnp.bfloat16)   # (bt, 512)

    z = jnp.dot(combined, fw1[...], preferred_element_type=jnp.float32) + fb1[...]
    z = jnp.maximum(z, 0.0)
    z = jnp.dot(z.astype(jnp.bfloat16), fw2[...], preferred_element_type=jnp.float32) + fb2[...]
    z = jnp.maximum(z, 0.0)
    logits = jnp.dot(z.astype(jnp.bfloat16), fw3[...], preferred_element_type=jnp.float32) + fb3[...]
    o_ref[...] = logits.reshape(o_ref.shape)                     # lane-dense (bt,1,128)


# --------------------------------------------------------------------------
# VMEM budgeting with padded-(8,128)-tile accounting
# --------------------------------------------------------------------------
def _ceil_to(a, b):
    return -(-a // b) * b


def _padded_bytes(shape, itemsize):
    if len(shape) < 2:
        return _ceil_to(int(shape[0]) * itemsize if shape else itemsize, 512)
    lead = 1
    for d in shape[:-2]:
        lead *= int(d)
    return lead * _ceil_to(int(shape[-2]), 8) * _ceil_to(int(shape[-1]), 128) * itemsize


# --------------------------------------------------------------------------
# Wrapper: single pallas_call, batch-tiled grid
# --------------------------------------------------------------------------
def cnn_ts_classifier(x, params, *, batch_tile=None, vmem_limit_bytes=None):
    """x: (B, seq_len, input_channels) f32 — same input convention as the PyTorch forward."""
    B, L0, C0 = x.shape
    assert L0 % 16 == 0 and L0 >= 16, "seq_len must be a multiple of 16 (4 MaxPool1d(2) stages)"

    if batch_tile is None:
        # >= 2 grid steps so ("parallel",) can shard across v7x's 2 TensorCores.
        # For v6e/v5e throughput, pass a larger batch_tile so M = bt*L >= 512.
        batch_tile = B // 2 if (B >= 2 and B % 2 == 0) else B
    bt = batch_tile
    assert B % bt == 0, "batch must be divisible by batch_tile"

    conv = params["conv"]          # [(cw, shift)] x 4 ; block 1 weight is im2col (3*C0, 32)
    fc = params["fc"]              # (fw1, fb1, fw2, fb2, fw3, fb3), fc3 lane-padded
    num_classes = params["num_classes"]
    ncls_pad = fc[-1].shape[-1]    # >= 128, multiple of 128

    # Block-1 im2col in XLA (cin=C0 is tiny; keeps the worst layout case and its
    # 32x-padded hp1 scratch out of the kernel). Negligible extra HBM traffic.
    xp = jnp.pad(x, ((0, 0), (1, 1), (0, 0)))
    x_i2c = jnp.concatenate([xp[:, 0:L0, :], xp[:, 1:L0 + 1, :], xp[:, 2:L0 + 2, :]],
                            axis=2)                                  # (B, L0, 3*C0)

    def const_spec(shape):
        nd = len(shape)
        # Grid-invariant weights: single-buffer (no pointless rotation / 2x VMEM).
        return pl.BlockSpec(shape, lambda i, _nd=nd: (0,) * _nd,
                            pipeline_mode=pl.Buffered(1))

    weights = []
    in_specs = [pl.BlockSpec((bt, L0, 3 * C0), lambda i: (i, 0, 0))]
    for w, s in conv:
        weights += [w, s]
        in_specs += [const_spec(w.shape), const_spec(s.shape)]
    for a in fc:
        weights.append(a)
        in_specs.append(const_spec(a.shape))

    # VMEM scratch: zero-padded inputs of blocks 2-4 + block-4 output (on-chip).
    Ls = [L0 // 2, L0 // 4, L0 // 8]
    Cs = [CONV_CHANNELS[0], CONV_CHANNELS[1], CONV_CHANNELS[2]]
    scratch = [pltpu.VMEM((bt, l + 2, c), jnp.float32) for l, c in zip(Ls, Cs)]
    scratch.append(pltpu.VMEM((bt, L0 // 16, CONV_CHANNELS[3]), jnp.float32))

    # VMEM budget with padded-shape accounting; clamp to 48 MiB (safe on v7x's
    # 64 MiB). On v5e/v6e (128 MiB physical), pass a larger limit + batch_tile.
    if vmem_limit_bytes is None:
        est = 2 * _padded_bytes((bt, L0, 3 * C0), 4)          # double-buffered input tile
        est += 2 * _padded_bytes((bt, 1, ncls_pad), 4)        # output tile
        for a in weights:
            est += _padded_bytes(a.shape, a.dtype.itemsize)   # single-buffered constants
        for l, c in zip(Ls, Cs):
            est += _padded_bytes((bt, l + 2, c), 4)
        est += _padded_bytes((bt, L0 // 16, CONV_CHANNELS[3]), 4)
        est = 3 * est                                         # headroom for compiler temps
        vmem_limit_bytes = int(min(max(est, 32 << 20), 48 << 20))

    out_padded = pl.pallas_call(
        fused_cnn_kernel,
        out_shape=jax.ShapeDtypeStruct((B, 1, ncls_pad), jnp.float32),
        grid=(B // bt,),
        in_specs=in_specs,
        out_specs=pl.BlockSpec((bt, 1, ncls_pad), lambda i: (i, 0, 0)),
        scratch_shapes=scratch,
        compiler_params=pltpu.CompilerParams(
            dimension_semantics=("parallel",),                # megacore-shardable batch grid
            vmem_limit_bytes=vmem_limit_bytes),
    )(x_i2c, *weights)

    return out_padded[:, 0, :num_classes]


# --------------------------------------------------------------------------
# Deterministic parameter init with host-side BN/bias folding
# --------------------------------------------------------------------------
def init_params(key, input_channels, num_classes):
    chans = [input_channels, *CONV_CHANNELS]
    keys = jax.random.split(key, 14)
    ki = 0

    conv_params = []
    for i in range(4):
        cin, cout = chans[i], chans[i + 1]
        w = 0.05 * jax.random.normal(keys[ki], (3, cin, cout), jnp.float32); ki += 1
        b = 0.05 * jax.random.normal(keys[ki], (1, cout), jnp.float32); ki += 1
        # BatchNorm1d eval-mode params (default init): gamma=1, beta=0, mean=0, var=1.
        gamma = jnp.ones((1, cout), jnp.float32)
        beta = jnp.zeros((1, cout), jnp.float32)
        mean = jnp.zeros((1, cout), jnp.float32)
        var = jnp.ones((1, cout), jnp.float32)
        scale = gamma * lax.rsqrt(var + BN_EPS)                   # (1, cout)
        shift = beta + scale * (b - mean)                         # folded conv bias + BN shift
        w_folded = w * scale                                      # fold BN scale (f32)
        if i == 0:
            w_out = w_folded.reshape(3 * cin, cout)               # im2col layout for block 1
        else:
            w_out = w_folded                                      # (3, cin, cout) per-tap
        conv_params.append((w_out.astype(jnp.bfloat16), shift.astype(jnp.float32)))

    fc = []
    fc_dims = [(CONV_CHANNELS[3] * 2, 512), (512, 256), (256, num_classes)]
    for j, (din, dout) in enumerate(fc_dims):
        w = 0.05 * jax.random.normal(keys[ki], (din, dout), jnp.float32); ki += 1
        b = 0.05 * jax.random.normal(keys[ki], (1, dout), jnp.float32); ki += 1
        if j == len(fc_dims) - 1:
            # Lane-dense logits: pad final layer to a multiple of 128 output columns.
            dpad = max(128, _ceil_to(dout, 128))
            w = jnp.pad(w, ((0, 0), (0, dpad - dout)))
            b = jnp.pad(b, ((0, 0), (0, dpad - dout)))
        fc.extend([w.astype(jnp.bfloat16), b.astype(jnp.float32)])
    return {"conv": conv_params, "fc": tuple(fc), "num_classes": num_classes}


# --------------------------------------------------------------------------
if __name__ == "__main__":
    key = jax.random.PRNGKey(0)
    kx, kp = jax.random.split(key)

    B, seq_len, input_channels, num_classes = 2, 32, 4, 3
    x = jax.random.normal(kx, (B, seq_len, input_channels), jnp.float32)
    params = init_params(kp, input_channels, num_classes)

    out = jax.jit(lambda inp: cnn_ts_classifier(inp, params))(x)
    out = jax.block_until_ready(out)

    assert out.shape == (B, num_classes), out.shape
    assert out.dtype == jnp.float32
    assert bool(jnp.all(jnp.isfinite(out)))
    print("KERNEL_OK")
</pallas_src>

<mosaic_0001>
module attributes {stable_mosaic.version = 11 : i64} {
  func.func @fused_cnn_kernel(%arg0: i32, %arg1: memref<1x32x12xf32, #tpu.memory_space<vmem>>, %arg2: memref<12x32xbf16, #tpu.memory_space<vmem>>, %arg3: memref<1x32xf32, #tpu.memory_space<vmem>>, %arg4: memref<3x32x64xbf16, #tpu.memory_space<vmem>>, %arg5: memref<1x64xf32, #tpu.memory_space<vmem>>, %arg6: memref<3x64x128xbf16, #tpu.memory_space<vmem>>, %arg7: memref<1x128xf32, #tpu.memory_space<vmem>>, %arg8: memref<3x128x256xbf16, #tpu.memory_space<vmem>>, %arg9: memref<1x256xf32, #tpu.memory_space<vmem>>, %arg10: memref<512x512xbf16, #tpu.memory_space<vmem>>, %arg11: memref<1x512xf32, #tpu.memory_space<vmem>>, %arg12: memref<512x256xbf16, #tpu.memory_space<vmem>>, %arg13: memref<1x256xf32, #tpu.memory_space<vmem>>, %arg14: memref<256x128xbf16, #tpu.memory_space<vmem>>, %arg15: memref<1x128xf32, #tpu.memory_space<vmem>>, %arg16: memref<1x1x128xf32, #tpu.memory_space<vmem>>, %arg17: memref<1x18x32xf32, #tpu.memory_space<vmem>>, %arg18: memref<1x10x64xf32, #tpu.memory_space<vmem>>, %arg19: memref<1x6x128xf32, #tpu.memory_space<vmem>>, %arg20: memref<1x2x256xf32, #tpu.memory_space<vmem>>) attributes {dimension_semantics = [#tpu.dimension_semantics<parallel>], iteration_bounds = array<i64: 2>, scalar_prefetch = 0 : i64, scratch_operands = 4 : i64, tpu.core_type = #tpu.core_type<tc>, window_params = [{transform_indices = @transform_0, window_bounds = array<i64: 1, 32, 12>}, {pipeline_mode = #tpu.pipeline_mode<synchronous>, transform_indices = @transform_1, window_bounds = array<i64: 12, 32>}, {pipeline_mode = #tpu.pipeline_mode<synchronous>, transform_indices = @transform_2, window_bounds = array<i64: 1, 32>}, {pipeline_mode = #tpu.pipeline_mode<synchronous>, transform_indices = @transform_3, window_bounds = array<i64: 3, 32, 64>}, {pipeline_mode = #tpu.pipeline_mode<synchronous>, transform_indices = @transform_4, window_bounds = array<i64: 1, 64>}, {pipeline_mode = #tpu.pipeline_mode<synchronous>, transform_indices = @transform_5, window_bounds = array<i64: 3, 64, 128>}, {pipeline_mode = #tpu.pipeline_mode<synchronous>, transform_indices = @transform_6, window_bounds = array<i64: 1, 128>}, {pipeline_mode = #tpu.pipeline_mode<synchronous>, transform_indices = @transform_7, window_bounds = array<i64: 3, 128, 256>}, {pipeline_mode = #tpu.pipeline_mode<synchronous>, transform_indices = @transform_8, window_bounds = array<i64: 1, 256>}, {pipeline_mode = #tpu.pipeline_mode<synchronous>, transform_indices = @transform_9, window_bounds = array<i64: 512, 512>}, {pipeline_mode = #tpu.pipeline_mode<synchronous>, transform_indices = @transform_10, window_bounds = array<i64: 1, 512>}, {pipeline_mode = #tpu.pipeline_mode<synchronous>, transform_indices = @transform_11, window_bounds = array<i64: 512, 256>}, {pipeline_mode = #tpu.pipeline_mode<synchronous>, transform_indices = @transform_12, window_bounds = array<i64: 1, 256>}, {pipeline_mode = #tpu.pipeline_mode<synchronous>, transform_indices = @transform_13, window_bounds = array<i64: 256, 128>}, {pipeline_mode = #tpu.pipeline_mode<synchronous>, transform_indices = @transform_14, window_bounds = array<i64: 1, 128>}, {transform_indices = @transform_15, window_bounds = array<i64: 1, 1, 128>}]} {
    %cst = arith.constant 0.000000e+00 : f32
    %0 = vector.broadcast %cst : f32 to vector<1x1x32xf32>
    %c0 = arith.constant 0 : index
    %c0_0 = arith.constant 0 : index
    %c0_1 = arith.constant 0 : index
    %1 = vector.load %arg17[%c0, %c0_0, %c0_1] : memref<1x18x32xf32, #tpu.memory_space<vmem>>, vector<1x1x32xf32>
    tpu.vector_store %arg17[%c0, %c0_0, %c0_1], %0 {strides = array<i32>} : memref<1x18x32xf32, #tpu.memory_space<vmem>>, vector<1x1x32xf32>,
    %c0_2 = arith.constant 0 : index
    %c17 = arith.constant 17 : index
    %c0_3 = arith.constant 0 : index
    %2 = vector.load %arg17[%c0_2, %c17, %c0_3] : memref<1x18x32xf32, #tpu.memory_space<vmem>>, vector<1x1x32xf32>
    tpu.vector_store %arg17[%c0_2, %c17, %c0_3], %0 {strides = array<i32>} : memref<1x18x32xf32, #tpu.memory_space<vmem>>, vector<1x1x32xf32>,
    %cst_4 = arith.constant 0.000000e+00 : f32
    %3 = vector.broadcast %cst_4 : f32 to vector<1x1x64xf32>
    %c0_5 = arith.constant 0 : index
    %c0_6 = arith.constant 0 : index
    %c0_7 = arith.constant 0 : index
    %4 = vector.load %arg18[%c0_5, %c0_6, %c0_7] : memref<1x10x64xf32, #tpu.memory_space<vmem>>, vector<1x1x64xf32>
    tpu.vector_store %arg18[%c0_5, %c0_6, %c0_7], %3 {strides = array<i32>} : memref<1x10x64xf32, #tpu.memory_space<vmem>>, vector<1x1x64xf32>,
    %c0_8 = arith.constant 0 : index
    %c9 = arith.constant 9 : index
    %c0_9 = arith.constant 0 : index
    %5 = vector.load %arg18[%c0_8, %c9, %c0_9] : memref<1x10x64xf32, #tpu.memory_space<vmem>>, vector<1x1x64xf32>
    tpu.vector_store %arg18[%c0_8, %c9, %c0_9], %3 {strides = array<i32>} : memref<1x10x64xf32, #tpu.memory_space<vmem>>, vector<1x1x64xf32>,
    %cst_10 = arith.constant 0.000000e+00 : f32
    %6 = vector.broadcast %cst_10 : f32 to vector<1x1x128xf32>
    %c0_11 = arith.constant 0 : index
    %c0_12 = arith.constant 0 : index
    %c0_13 = arith.constant 0 : index
    %7 = vector.load %arg19[%c0_11, %c0_12, %c0_13] : memref<1x6x128xf32, #tpu.memory_space<vmem>>, vector<1x1x128xf32>
    tpu.vector_store %arg19[%c0_11, %c0_12, %c0_13], %6 {strides = array<i32>} : memref<1x6x128xf32, #tpu.memory_space<vmem>>, vector<1x1x128xf32>,
    %c0_14 = arith.constant 0 : index
    %c5 = arith.constant 5 : index
    %c0_15 = arith.constant 0 : index
    %8 = vector.load %arg19[%c0_14, %c5, %c0_15] : memref<1x6x128xf32, #tpu.memory_space<vmem>>, vector<1x1x128xf32>
    tpu.vector_store %arg19[%c0_14, %c5, %c0_15], %6 {strides = array<i32>} : memref<1x6x128xf32, #tpu.memory_space<vmem>>, vector<1x1x128xf32>,
    %c0_16 = arith.constant 0 : index
    %c0_17 = arith.constant 0 : index
    %c0_18 = arith.constant 0 : index
    %9 = vector.load %arg1[%c0_16, %c0_17, %c0_18] : memref<1x32x12xf32, #tpu.memory_space<vmem>>, vector<1x32x12xf32>
    %10 = vector.shape_cast %9 : vector<1x32x12xf32> to vector<32x12xf32>
    %11 = arith.truncf %10 : vector<32x12xf32> to vector<32x12xbf16>
    %c0_19 = arith.constant 0 : index
    %c0_20 = arith.constant 0 : index
    %12 = vector.load %arg2[%c0_19, %c0_20] : memref<12x32xbf16, #tpu.memory_space<vmem>>, vector<12x32xbf16>
    %cst_21 = arith.constant dense<0.000000e+00> : vector<32x32xf32>
    %13 = tpu.matmul %11, %12, %cst_21 {dimension_numbers = #tpu.dot_dimension_numbers<[1], [0], [0], [1], [0, 0, 1, 1], [], []>} : vector<32x12xbf16>, vector<12x32xbf16>, vector<32x32xf32> -> vector<32x32xf32>
    %c0_22 = arith.constant 0 : index
    %c0_23 = arith.constant 0 : index
    %14 = vector.load %arg3[%c0_22, %c0_23] : memref<1x32xf32, #tpu.memory_space<vmem>>, vector<1x32xf32>
    %15 = vector.broadcast %14 : vector<1x32xf32> to vector<32x32xf32>
    %16 = arith.addf %13, %15 : vector<32x32xf32>
    %cst_24 = arith.constant 0.000000e+00 : f32
    %17 = vector.broadcast %cst_24 : f32 to vector<32x32xf32>
    %18 = arith.maximumf %16, %17 : vector<32x32xf32>
    %19 = vector.shape_cast %18 : vector<32x32xf32> to vector<16x2x32xf32>
    %cst_25 = arith.constant dense<0xFF800000> : vector<16x32xf32>
    %20 = vector.multi_reduction <maximumf>, %19, %cst_25 [1] : vector<16x2x32xf32> to vector<16x32xf32>
    %21 = vector.shape_cast %20 : vector<16x32xf32> to vector<1x16x32xf32>
    %c0_26 = arith.constant 0 : index
    %c1 = arith.constant 1 : index
    %c0_27 = arith.constant 0 : index
    %22 = vector.load %arg17[%c0_26, %c1, %c0_27] : memref<1x18x32xf32, #tpu.memory_space<vmem>>, vector<1x16x32xf32>
    tpu.vector_store %arg17[%c0_26, %c1, %c0_27], %21 {strides = array<i32>} : memref<1x18x32xf32, #tpu.memory_space<vmem>>, vector<1x16x32xf32>,
    %c0_28 = arith.constant 0 : index
    %c0_29 = arith.constant 0 : index
    %c0_30 = arith.constant 0 : index
    %23 = vector.load %arg17[%c0_28, %c0_29, %c0_30] : memref<1x18x32xf32, #tpu.memory_space<vmem>>, vector<1x16x32xf32>
    %24 = vector.shape_cast %23 : vector<1x16x32xf32> to vector<16x32xf32>
    %25 = arith.truncf %24 : vector<16x32xf32> to vector<16x32xbf16>
    %c0_31 = arith.constant 0 : index
    %c0_32 = arith.constant 0 : index
    %c0_33 = arith.constant 0 : index
    %26 = vector.load %arg4[%c0_31, %c0_32, %c0_33] : memref<3x32x64xbf16, #tpu.memory_space<vmem>>, vector<1x32x64xbf16>
    %27 = vector.shape_cast %26 : vector<1x32x64xbf16> to vector<32x64xbf16>
    %cst_34 = arith.constant dense<0.000000e+00> : vector<16x64xf32>
    %28 = tpu.matmul %25, %27, %cst_34 {dimension_numbers = #tpu.dot_dimension_numbers<[1], [0], [0], [1], [0, 0, 1, 1], [], []>} : vector<16x32xbf16>, vector<32x64xbf16>, vector<16x64xf32> -> vector<16x64xf32>
    %c0_35 = arith.constant 0 : index
    %c1_36 = arith.constant 1 : index
    %c0_37 = arith.constant 0 : index
    %29 = vector.load %arg17[%c0_35, %c1_36, %c0_37] : memref<1x18x32xf32, #tpu.memory_space<vmem>>, vector<1x16x32xf32>
    %30 = vector.shape_cast %29 : vector<1x16x32xf32> to vector<16x32xf32>
    %31 = arith.truncf %30 : vector<16x32xf32> to vector<16x32xbf16>
    %c1_38 = arith.constant 1 : index
    %c0_39 = arith.constant 0 : index
    %c0_40 = arith.constant 0 : index
    %32 = vector.load %arg4[%c1_38, %c0_39, %c0_40] : memref<3x32x64xbf16, #tpu.memory_space<vmem>>, vector<1x32x64xbf16>
    %33 = vector.shape_cast %32 : vector<1x32x64xbf16> to vector<32x64xbf16>
    %cst_41 = arith.constant dense<0.000000e+00> : vector<16x64xf32>
    %34 = tpu.matmul %31, %33, %cst_41 {dimension_numbers = #tpu.dot_dimension_numbers<[1], [0], [0], [1], [0, 0, 1, 1], [], []>} : vector<16x32xbf16>, vector<32x64xbf16>, vector<16x64xf32> -> vector<16x64xf32>
    %35 = arith.addf %28, %34 : vector<16x64xf32>
    %c0_42 = arith.constant 0 : index
    %c2 = arith.constant 2 : index
    %c0_43 = arith.constant 0 : index
    %36 = vector.load %arg17[%c0_42, %c2, %c0_43] : memref<1x18x32xf32, #tpu.memory_space<vmem>>, vector<1x16x32xf32>
    %37 = vector.shape_cast %36 : vector<1x16x32xf32> to vector<16x32xf32>
    %38 = arith.truncf %37 : vector<16x32xf32> to vector<16x32xbf16>
    %c2_44 = arith.constant 2 : index
    %c0_45 = arith.constant 0 : index
    %c0_46 = arith.constant 0 : index
    %39 = vector.load %arg4[%c2_44, %c0_45, %c0_46] : memref<3x32x64xbf16, #tpu.memory_space<vmem>>, vector<1x32x64xbf16>
    %40 = vector.shape_cast %39 : vector<1x32x64xbf16> to vector<32x64xbf16>
    %cst_47 = arith.constant dense<0.000000e+00> : vector<16x64xf32>
    %41 = tpu.matmul %38, %40, %cst_47 {dimension_numbers = #tpu.dot_dimension_numbers<[1], [0], [0], [1], [0, 0, 1, 1], [], []>} : vector<16x32xbf16>, vector<32x64xbf16>, vector<16x64xf32> -> vector<16x64xf32>
    %42 = arith.addf %35, %41 : vector<16x64xf32>
    %c0_48 = arith.constant 0 : index
    %c0_49 = arith.constant 0 : index
    %43 = vector.load %arg5[%c0_48, %c0_49] : memref<1x64xf32, #tpu.memory_space<vmem>>, vector<1x64xf32>
    %44 = vector.broadcast %43 : vector<1x64xf32> to vector<16x64xf32>
    %45 = arith.addf %42, %44 : vector<16x64xf32>
    %cst_50 = arith.constant 0.000000e+00 : f32
    %46 = vector.broadcast %cst_50 : f32 to vector<16x64xf32>
    %47 = arith.maximumf %45, %46 : vector<16x64xf32>
    %48 = vector.shape_cast %47 : vector<16x64xf32> to vector<8x2x64xf32>
    %cst_51 = arith.constant dense<0xFF800000> : vector<8x64xf32>
    %49 = vector.multi_reduction <maximumf>, %48, %cst_51 [1] : vector<8x2x64xf32> to vector<8x64xf32>
    %50 = vector.shape_cast %49 : vector<8x64xf32> to vector<1x8x64xf32>
    %c0_52 = arith.constant 0 : index
    %c1_53 = arith.constant 1 : index
    %c0_54 = arith.constant 0 : index
    %51 = vector.load %arg18[%c0_52, %c1_53, %c0_54] : memref<1x10x64xf32, #tpu.memory_space<vmem>>, vector<1x8x64xf32>
    tpu.vector_store %arg18[%c0_52, %c1_53, %c0_54], %50 {strides = array<i32>} : memref<1x10x64xf32, #tpu.memory_space<vmem>>, vector<1x8x64xf32>,
    %c0_55 = arith.constant 0 : index
    %c0_56 = arith.constant 0 : index
    %c0_57 = arith.constant 0 : index
    %52 = vector.load %arg18[%c0_55, %c0_56, %c0_57] : memref<1x10x64xf32, #tpu.memory_space<vmem>>, vector<1x8x64xf32>
    %53 = vector.shape_cast %52 : vector<1x8x64xf32> to vector<8x64xf32>
    %54 = arith.truncf %53 : vector<8x64xf32> to vector<8x64xbf16>
    %c0_58 = arith.constant 0 : index
    %c0_59 = arith.constant 0 : index
    %c0_60 = arith.constant 0 : index
    %55 = vector.load %arg6[%c0_58, %c0_59, %c0_60] : memref<3x64x128xbf16, #tpu.memory_space<vmem>>, vector<1x64x128xbf16>
    %56 = vector.shape_cast %55 : vector<1x64x128xbf16> to vector<64x128xbf16>
    %cst_61 = arith.constant dense<0.000000e+00> : vector<8x128xf32>
    %57 = tpu.matmul %54, %56, %cst_61 {dimension_numbers = #tpu.dot_dimension_numbers<[1], [0], [0], [1], [0, 0, 1, 1], [], []>} : vector<8x64xbf16>, vector<64x128xbf16>, vector<8x128xf32> -> vector<8x128xf32>
    %c0_62 = arith.constant 0 : index
    %c1_63 = arith.constant 1 : index
    %c0_64 = arith.constant 0 : index
    %58 = vector.load %arg18[%c0_62, %c1_63, %c0_64] : memref<1x10x64xf32, #tpu.memory_space<vmem>>, vector<1x8x64xf32>
    %59 = vector.shape_cast %58 : vector<1x8x64xf32> to vector<8x64xf32>
    %60 = arith.truncf %59 : vector<8x64xf32> to vector<8x64xbf16>
    %c1_65 = arith.constant 1 : index
    %c0_66 = arith.constant 0 : index
    %c0_67 = arith.constant 0 : index
    %61 = vector.load %arg6[%c1_65, %c0_66, %c0_67] : memref<3x64x128xbf16, #tpu.memory_space<vmem>>, vector<1x64x128xbf16>
    %62 = vector.shape_cast %61 : vector<1x64x128xbf16> to vector<64x128xbf16>
    %cst_68 = arith.constant dense<0.000000e+00> : vector<8x128xf32>
    %63 = tpu.matmul %60, %62, %cst_68 {dimension_numbers = #tpu.dot_dimension_numbers<[1], [0], [0], [1], [0, 0, 1, 1], [], []>} : vector<8x64xbf16>, vector<64x128xbf16>, vector<8x128xf32> -> vector<8x128xf32>
    %64 = arith.addf %57, %63 : vector<8x128xf32>
    %c0_69 = arith.constant 0 : index
    %c2_70 = arith.constant 2 : index
    %c0_71 = arith.constant 0 : index
    %65 = vector.load %arg18[%c0_69, %c2_70, %c0_71] : memref<1x10x64xf32, #tpu.memory_space<vmem>>, vector<1x8x64xf32>
    %66 = vector.shape_cast %65 : vector<1x8x64xf32> to vector<8x64xf32>
    %67 = arith.truncf %66 : vector<8x64xf32> to vector<8x64xbf16>
    %c2_72 = arith.constant 2 : index
    %c0_73 = arith.constant 0 : index
    %c0_74 = arith.constant 0 : index
    %68 = vector.load %arg6[%c2_72, %c0_73, %c0_74] : memref<3x64x128xbf16, #tpu.memory_space<vmem>>, vector<1x64x128xbf16>
    %69 = vector.shape_cast %68 : vector<1x64x128xbf16> to vector<64x128xbf16>
    %cst_75 = arith.constant dense<0.000000e+00> : vector<8x128xf32>
    %70 = tpu.matmul %67, %69, %cst_75 {dimension_numbers = #tpu.dot_dimension_numbers<[1], [0], [0], [1], [0, 0, 1, 1], [], []>} : vector<8x64xbf16>, vector<64x128xbf16>, vector<8x128xf32> -> vector<8x128xf32>
    %71 = arith.addf %64, %70 : vector<8x128xf32>
    %c0_76 = arith.constant 0 : index
    %c0_77 = arith.constant 0 : index
    %72 = vector.load %arg7[%c0_76, %c0_77] : memref<1x128xf32, #tpu.memory_space<vmem>>, vector<1x128xf32>
    %73 = vector.broadcast %72 : vector<1x128xf32> to vector<8x128xf32>
    %74 = arith.addf %71, %73 : vector<8x128xf32>
    %cst_78 = arith.constant 0.000000e+00 : f32
    %75 = vector.broadcast %cst_78 : f32 to vector<8x128xf32>
    %76 = arith.maximumf %74, %75 : vector<8x128xf32>
    %77 = vector.shape_cast %76 : vector<8x128xf32> to vector<4x2x128xf32>
    %cst_79 = arith.constant dense<0xFF800000> : vector<4x128xf32>
    %78 = vector.multi_reduction <maximumf>, %77, %cst_79 [1] : vector<4x2x128xf32> to vector<4x128xf32>
    %79 = vector.shape_cast %78 : vector<4x128xf32> to vector<1x4x128xf32>
    %c0_80 = arith.constant 0 : index
    %c1_81 = arith.constant 1 : index
    %c0_82 = arith.constant 0 : index
    %80 = vector.load %arg19[%c0_80, %c1_81, %c0_82] : memref<1x6x128xf32, #tpu.memory_space<vmem>>, vector<1x4x128xf32>
    tpu.vector_store %arg19[%c0_80, %c1_81, %c0_82], %79 {strides = array<i32>} : memref<1x6x128xf32, #tpu.memory_space<vmem>>, vector<1x4x128xf32>,
    %c0_83 = arith.constant 0 : index
    %c0_84 = arith.constant 0 : index
    %c0_85 = arith.constant 0 : index
    %81 = vector.load %arg19[%c0_83, %c0_84, %c0_85] : memref<1x6x128xf32, #tpu.memory_space<vmem>>, vector<1x4x128xf32>
    %82 = vector.shape_cast %81 : vector<1x4x128xf32> to vector<4x128xf32>
    %83 = arith.truncf %82 : vector<4x128xf32> to vector<4x128xbf16>
    %c0_86 = arith.constant 0 : index
    %c0_87 = arith.constant 0 : index
    %c0_88 = arith.constant 0 : index
    %84 = vector.load %arg8[%c0_86, %c0_87, %c0_88] : memref<3x128x256xbf16, #tpu.memory_space<vmem>>, vector<1x128x256xbf16>
    %85 = vector.shape_cast %84 : vector<1x128x256xbf16> to vector<128x256xbf16>
    %cst_89 = arith.constant dense<0.000000e+00> : vector<4x256xf32>
    %86 = tpu.matmul %83, %85, %cst_89 {dimension_numbers = #tpu.dot_dimension_numbers<[1], [0], [0], [1], [0, 0, 1, 1], [], []>} : vector<4x128xbf16>, vector<128x256xbf16>, vector<4x256xf32> -> vector<4x256xf32>
    %c0_90 = arith.constant 0 : index
    %c1_91 = arith.constant 1 : index
    %c0_92 = arith.constant 0 : index
    %87 = vector.load %arg19[%c0_90, %c1_91, %c0_92] : memref<1x6x128xf32, #tpu.memory_space<vmem>>, vector<1x4x128xf32>
    %88 = vector.shape_cast %87 : vector<1x4x128xf32> to vector<4x128xf32>
    %89 = arith.truncf %88 : vector<4x128xf32> to vector<4x128xbf16>
    %c1_93 = arith.constant 1 : index
    %c0_94 = arith.constant 0 : index
    %c0_95 = arith.constant 0 : index
    %90 = vector.load %arg8[%c1_93, %c0_94, %c0_95] : memref<3x128x256xbf16, #tpu.memory_space<vmem>>, vector<1x128x256xbf16>
    %91 = vector.shape_cast %90 : vector<1x128x256xbf16> to vector<128x256xbf16>
    %cst_96 = arith.constant dense<0.000000e+00> : vector<4x256xf32>
    %92 = tpu.matmul %89, %91, %cst_96 {dimension_numbers = #tpu.dot_dimension_numbers<[1], [0], [0], [1], [0, 0, 1, 1], [], []>} : vector<4x128xbf16>, vector<128x256xbf16>, vector<4x256xf32> -> vector<4x256xf32>
    %93 = arith.addf %86, %92 : vector<4x256xf32>
    %c0_97 = arith.constant 0 : index
    %c2_98 = arith.constant 2 : index
    %c0_99 = arith.constant 0 : index
    %94 = vector.load %arg19[%c0_97, %c2_98, %c0_99] : memref<1x6x128xf32, #tpu.memory_space<vmem>>, vector<1x4x128xf32>
    %95 = vector.shape_cast %94 : vector<1x4x128xf32> to vector<4x128xf32>
    %96 = arith.truncf %95 : vector<4x128xf32> to vector<4x128xbf16>
    %c2_100 = arith.constant 2 : index
    %c0_101 = arith.constant 0 : index
    %c0_102 = arith.constant 0 : index
    %97 = vector.load %arg8[%c2_100, %c0_101, %c0_102] : memref<3x128x256xbf16, #tpu.memory_space<vmem>>, vector<1x128x256xbf16>
    %98 = vector.shape_cast %97 : vector<1x128x256xbf16> to vector<128x256xbf16>
    %cst_103 = arith.constant dense<0.000000e+00> : vector<4x256xf32>
    %99 = tpu.matmul %96, %98, %cst_103 {dimension_numbers = #tpu.dot_dimension_numbers<[1], [0], [0], [1], [0, 0, 1, 1], [], []>} : vector<4x128xbf16>, vector<128x256xbf16>, vector<4x256xf32> -> vector<4x256xf32>
    %100 = arith.addf %93, %99 : vector<4x256xf32>
    %c0_104 = arith.constant 0 : index
    %c0_105 = arith.constant 0 : index
    %101 = vector.load %arg9[%c0_104, %c0_105] : memref<1x256xf32, #tpu.memory_space<vmem>>, vector<1x256xf32>
    %102 = vector.broadcast %101 : vector<1x256xf32> to vector<4x256xf32>
    %103 = arith.addf %100, %102 : vector<4x256xf32>
    %cst_106 = arith.constant 0.000000e+00 : f32
    %104 = vector.broadcast %cst_106 : f32 to vector<4x256xf32>
    %105 = arith.maximumf %103, %104 : vector<4x256xf32>
    %106 = vector.shape_cast %105 : vector<4x256xf32> to vector<2x2x256xf32>
    %cst_107 = arith.constant dense<0xFF800000> : vector<2x256xf32>
    %107 = vector.multi_reduction <maximumf>, %106, %cst_107 [1] : vector<2x2x256xf32> to vector<2x256xf32>
    %108 = vector.shape_cast %107 : vector<2x256xf32> to vector<1x2x256xf32>
    %c0_108 = arith.constant 0 : index
    %c0_109 = arith.constant 0 : index
    %c0_110 = arith.constant 0 : index
    %109 = vector.load %arg20[%c0_108, %c0_109, %c0_110] : memref<1x2x256xf32, #tpu.memory_space<vmem>>, vector<1x2x256xf32>
    tpu.vector_store %arg20[%c0_108, %c0_109, %c0_110], %108 {strides = array<i32>} : memref<1x2x256xf32, #tpu.memory_space<vmem>>, vector<1x2x256xf32>,
    %c0_111 = arith.constant 0 : index
    %c0_112 = arith.constant 0 : index
    %c0_113 = arith.constant 0 : index
    %110 = vector.load %arg20[%c0_111, %c0_112, %c0_113] : memref<1x2x256xf32, #tpu.memory_space<vmem>>, vector<1x2x256xf32>
    %cst_114 = arith.constant dense<0.000000e+00> : vector<1x256xf32>
    %111 = vector.multi_reduction <add>, %110, %cst_114 [1] : vector<1x2x256xf32> to vector<1x256xf32>
    %cst_115 = arith.constant 2.000000e+00 : f32
    %112 = vector.broadcast %cst_115 : f32 to vector<1x256xf32>
    %113 = arith.divf %111, %112 : vector<1x256xf32>
    %cst_116 = arith.constant dense<0xFF800000> : vector<1x256xf32>
    %114 = vector.multi_reduction <maximumf>, %110, %cst_116 [1] : vector<1x2x256xf32> to vector<1x256xf32>
    %115 = tpu.concatenate %113, %114 in 1 : vector<1x256xf32>, vector<1x256xf32> -> vector<1x512xf32>
    %116 = arith.truncf %115 : vector<1x512xf32> to vector<1x512xbf16>
    %c0_117 = arith.constant 0 : index
    %c0_118 = arith.constant 0 : index
    %117 = vector.load %arg10[%c0_117, %c0_118] : memref<512x512xbf16, #tpu.memory_space<vmem>>, vector<512x512xbf16>
    %cst_119 = arith.constant dense<0.000000e+00> : vector<1x512xf32>
    %118 = tpu.matmul %116, %117, %cst_119 {dimension_numbers = #tpu.dot_dimension_numbers<[1], [0], [0], [1], [0, 0, 1, 1], [], []>} : vector<1x512xbf16>, vector<512x512xbf16>, vector<1x512xf32> -> vector<1x512xf32>
    %c0_120 = arith.constant 0 : index
    %c0_121 = arith.constant 0 : index
    %119 = vector.load %arg11[%c0_120, %c0_121] : memref<1x512xf32, #tpu.memory_space<vmem>>, vector<1x512xf32>
    %120 = arith.addf %118, %119 : vector<1x512xf32>
    %cst_122 = arith.constant 0.000000e+00 : f32
    %121 = vector.broadcast %cst_122 : f32 to vector<1x512xf32>
    %122 = arith.maximumf %120, %121 : vector<1x512xf32>
    %123 = arith.truncf %122 : vector<1x512xf32> to vector<1x512xbf16>
    %c0_123 = arith.constant 0 : index
    %c0_124 = arith.constant 0 : index
    %124 = vector.load %arg12[%c0_123, %c0_124] : memref<512x256xbf16, #tpu.memory_space<vmem>>, vector<512x256xbf16>
    %cst_125 = arith.constant dense<0.000000e+00> : vector<1x256xf32>
    %125 = tpu.matmul %123, %124, %cst_125 {dimension_numbers = #tpu.dot_dimension_numbers<[1], [0], [0], [1], [0, 0, 1, 1], [], []>} : vector<1x512xbf16>, vector<512x256xbf16>, vector<1x256xf32> -> vector<1x256xf32>
    %c0_126 = arith.constant 0 : index
    %c0_127 = arith.constant 0 : index
    %126 = vector.load %arg13[%c0_126, %c0_127] : memref<1x256xf32, #tpu.memory_space<vmem>>, vector<1x256xf32>
    %127 = arith.addf %125, %126 : vector<1x256xf32>
    %cst_128 = arith.constant 0.000000e+00 : f32
    %128 = vector.broadcast %cst_128 : f32 to vector<1x256xf32>
    %129 = arith.maximumf %127, %128 : vector<1x256xf32>
    %130 = arith.truncf %129 : vector<1x256xf32> to vector<1x256xbf16>
    %c0_129 = arith.constant 0 : index
    %c0_130 = arith.constant 0 : index
    %131 = vector.load %arg14[%c0_129, %c0_130] : memref<256x128xbf16, #tpu.memory_space<vmem>>, vector<256x128xbf16>
    %cst_131 = arith.constant dense<0.000000e+00> : vector<1x128xf32>
    %132 = tpu.matmul %130, %131, %cst_131 {dimension_numbers = #tpu.dot_dimension_numbers<[1], [0], [0], [1], [0, 0, 1, 1], [], []>} : vector<1x256xbf16>, vector<256x128xbf16>, vector<1x128xf32> -> vector<1x128xf32>
    %c0_132 = arith.constant 0 : index
    %c0_133 = arith.constant 0 : index
    %133 = vector.load %arg15[%c0_132, %c0_133] : memref<1x128xf32, #tpu.memory_space<vmem>>, vector<1x128xf32>
    %134 = arith.addf %132, %133 : vector<1x128xf32>
    %135 = vector.shape_cast %134 : vector<1x128xf32> to vector<1x1x128xf32>
    %c0_134 = arith.constant 0 : index
    %c0_135 = arith.constant 0 : index
    %c0_136 = arith.constant 0 : index
    %136 = vector.load %arg16[%c0_134, %c0_135, %c0_136] : memref<1x1x128xf32, #tpu.memory_space<vmem>>, vector<1x1x128xf32>
    tpu.vector_store %arg16[%c0_134, %c0_135, %c0_136], %135 {strides = array<i32>} : memref<1x1x128xf32, #tpu.memory_space<vmem>>, vector<1x1x128xf32>,
    return
  }
  func.func @transform_0(%arg0: i32) -> (i32, i32, i32) {
    %c0_i32 = arith.constant 0 : i32
    %c0_i32_0 = arith.constant 0 : i32
    %c0_i32_1 = arith.constant 0 : i32
    return %arg0, %c0_i32, %c0_i32_0 : i32, i32, i32
  }
  func.func @transform_1(%arg0: i32) -> (i32, i32) {
    %c0_i32 = arith.constant 0 : i32
    %c0_i32_0 = arith.constant 0 : i32
    %c0_i32_1 = arith.constant 0 : i32
    return %c0_i32, %c0_i32_0 : i32, i32
  }
  func.func @transform_2(%arg0: i32) -> (i32, i32) {
    %c0_i32 = arith.constant 0 : i32
    %c0_i32_0 = arith.constant 0 : i32
    %c0_i32_1 = arith.constant 0 : i32
    return %c0_i32, %c0_i32_0 : i32, i32
  }
  func.func @transform_3(%arg0: i32) -> (i32, i32, i32) {
    %c0_i32 = arith.constant 0 : i32
    %c0_i32_0 = arith.constant 0 : i32
    %c0_i32_1 = arith.constant 0 : i32
    %c0_i32_2 = arith.constant 0 : i32
    return %c0_i32, %c0_i32_0, %c0_i32_1 : i32, i32, i32
  }
  func.func @transform_4(%arg0: i32) -> (i32, i32) {
    %c0_i32 = arith.constant 0 : i32
    %c0_i32_0 = arith.constant 0 : i32
    %c0_i32_1 = arith.constant 0 : i32
    return %c0_i32, %c0_i32_0 : i32, i32
  }
  func.func @transform_5(%arg0: i32) -> (i32, i32, i32) {
    %c0_i32 = arith.constant 0 : i32
    %c0_i32_0 = arith.constant 0 : i32
    %c0_i32_1 = arith.constant 0 : i32
    %c0_i32_2 = arith.constant 0 : i32
    return %c0_i32, %c0_i32_0, %c0_i32_1 : i32, i32, i32
  }
  func.func @transform_6(%arg0: i32) -> (i32, i32) {
    %c0_i32 = arith.constant 0 : i32
    %c0_i32_0 = arith.constant 0 : i32
    %c0_i32_1 = arith.constant 0 : i32
    return %c0_i32, %c0_i32_0 : i32, i32
  }
  func.func @transform_7(%arg0: i32) -> (i32, i32, i32) {
    %c0_i32 = arith.constant 0 : i32
    %c0_i32_0 = arith.constant 0 : i32
    %c0_i32_1 = arith.constant 0 : i32
    %c0_i32_2 = arith.constant 0 : i32
    return %c0_i32, %c0_i32_0, %c0_i32_1 : i32, i32, i32
  }
  func.func @transform_8(%arg0: i32) -> (i32, i32) {
    %c0_i32 = arith.constant 0 : i32
    %c0_i32_0 = arith.constant 0 : i32
    %c0_i32_1 = arith.constant 0 : i32
    return %c0_i32, %c0_i32_0 : i32, i32
  }
  func.func @transform_9(%arg0: i32) -> (i32, i32) {
    %c0_i32 = arith.constant 0 : i32
    %c0_i32_0 = arith.constant 0 : i32
    %c0_i32_1 = arith.constant 0 : i32
    return %c0_i32, %c0_i32_0 : i32, i32
  }
  func.func @transform_10(%arg0: i32) -> (i32, i32) {
    %c0_i32 = arith.constant 0 : i32
    %c0_i32_0 = arith.constant 0 : i32
    %c0_i32_1 = arith.constant 0 : i32
    return %c0_i32, %c0_i32_0 : i32, i32
  }
  func.func @transform_11(%arg0: i32) -> (i32, i32) {
    %c0_i32 = arith.constant 0 : i32
    %c0_i32_0 = arith.constant 0 : i32
    %c0_i32_1 = arith.constant 0 : i32
    return %c0_i32, %c0_i32_0 : i32, i32
  }
  func.func @transform_12(%arg0: i32) -> (i32, i32) {
    %c0_i32 = arith.constant 0 : i32
    %c0_i32_0 = arith.constant 0 : i32
    %c0_i32_1 = arith.constant 0 : i32
    return %c0_i32, %c0_i32_0 : i32, i32
  }
  func.func @transform_13(%arg0: i32) -> (i32, i32) {
    %c0_i32 = arith.constant 0 : i32
    %c0_i32_0 = arith.constant 0 : i32
    %c0_i32_1 = arith.constant 0 : i32
    return %c0_i32, %c0_i32_0 : i32, i32
  }
  func.func @transform_14(%arg0: i32) -> (i32, i32) {
    %c0_i32 = arith.constant 0 : i32
    %c0_i32_0 = arith.constant 0 : i32
    %c0_i32_1 = arith.constant 0 : i32
    return %c0_i32, %c0_i32_0 : i32, i32
  }
  func.func @transform_15(%arg0: i32) -> (i32, i32, i32) {
    %c0_i32 = arith.constant 0 : i32
    %c0_i32_0 = arith.constant 0 : i32
    %c0_i32_1 = arith.constant 0 : i32
    return %arg0, %c0_i32, %c0_i32_0 : i32, i32, i32
  }
}

</mosaic_0001>

<bundles_post_ra>
// kernel: _lambda_.1
= control target key start
LH: loop header
LB: loop body
LE: loop exit
PB: predicated region body
PF: predicated region fallthrough
CT: control target
= control target key end

     0   :  { %s5599_s0 = inlined_call_operand.vmem [shape: f32[2,32,12], index: 0, kind: input, shape index: {}]   ;;  %s5600_s1 = inlined_call_operand.vmem [shape: bf16[12,32], index: 1, kind: input, shape index: {}]   ;;  %s5601_s2 = inlined_call_operand.vmem [shape: f32[1,32], index: 2, kind: input, shape index: {}]   ;;  %s5602_s3 = inlined_call_operand.hbm [shape: bf16[3,32,64], index: 3, kind: input, shape index: {}]   ;;  %s5603_s4 = inlined_call_operand.vmem [shape: f32[1,64], index: 4, kind: input, shape index: {}]   ;;  %s5604_s5 = inlined_call_operand.hbm [shape: bf16[3,64,128], index: 5, kind: input, shape index: {}]   ;;  %s5605_s6 = inlined_call_operand.vmem [shape: f32[1,128], index: 6, kind: input, shape index: {}]   ;;  %s5606_s7 = inlined_call_operand.hbm [shape: bf16[3,128,256], index: 7, kind: input, shape index: {}]   ;;  %s5607_s8 = inlined_call_operand.vmem [shape: f32[1,256], index: 8, kind: input, shape index: {}]   ;;  %s5608_s9 = inlined_call_operand.hbm [shape: bf16[512,512], index: 9, kind: input, shape index: {}]   ;;  %s5609_s10 = inlined_call_operand.vmem [shape: f32[1,512], index: 10, kind: input, shape index: {}]   ;;  %s5610_s11 = inlined_call_operand.vmem [shape: bf16[512,256], index: 11, kind: input, shape index: {}]   ;;  %s5611_s12 = inlined_call_operand.vmem [shape: f32[1,256], index: 12, kind: input, shape index: {}]   ;;  %s5612_s13 = inlined_call_operand.hbm [shape: bf16[256,128], index: 13, kind: input, shape index: {}]   ;;  %s5613_s14 = inlined_call_operand.vmem [shape: f32[1,128], index: 14, kind: input, shape index: {}]   ;;  %s5614_s15 = inlined_call_operand.hbm [shape: f32[2,1,128], index: 15, kind: output, shape index: {}]  }
   0x1   :  { %5629 = sst [smem:[#allocation27_spill]] %s5614_s15 }
   0x2   :  { %20 = vsyncpa [#allocation7], 0 }
   0x3   :  { %21 = vsyncpa [#allocation10], 0 }
   0x4   :  { %22 = vsyncpa [#allocation13], 0 }
   0x5   :  { %23 = vsyncpa [#allocation8], 0 }
   0x6   :  { %25 = vsyncpa [#allocation8 + $0x1], 0  ;;  %s5049_s18 = smov 0   ;;  %s5051_s19 = smov 0  }
   0x7   :  { %s5053_s20 = smov 0   ;;  %s5055_s21 = smov 0  }
   0x8 LB: > { %5630 = sst [smem:[#allocation20_spill]] %s4939_s18  ;;  %s5070_s22 = sadd.s32 4294967295, %s4951_s21   ;;  %s4951_s21 = sphi %s5055_s21, %s5656_s21   ;;  %s4947_s20 = sphi %s5053_s20, %s5658_s20   ;;  %s4943_s19 = sphi %s5051_s19, %s5660_s19   ;;  %s4939_s18 = sphi %s5049_s18, %s5659_s18  }
   0x9   : > { %5631 = sst [smem:[#allocation21_spill]] %s4947_s20  ;;  %s3831_s23 = sadd.s32 4294967294, %s4951_s21  }
   0xa   : > { %5632 = sst [smem:[#allocation22_spill]] %s4951_s21  ;;  %s5074_s24 = sadd.s32 1, %s4951_s21  }
   0xb   : > { %5633 = sst [smem:[#allocation23_spill]] %s5074_s24  ;;  %s358_s25 = sadd.s32 1, %s4947_s20 }
   0xc   : > { %s355_s26 = ssub.s32 %s4951_s21, %s5074_s24  ;;  %p368_p0 = scmp.ne.s32.totalorder %s4947_s20, %s4943_s19 }
   0xd   : > { %p356_p1 = scmp.eq.s32.totalorder %s355_s26, 0  ;;  %p369_p2 = scmp.eq.s32.totalorder %s5070_s22, 1 }
   0xe   : > { %p374_p3 = scmp.ne.s32.totalorder %s4943_s19, %s4939_s18  ;;  %p375_p4 = scmp.eq.s32.totalorder %s3831_s23, 1 }
   0xf   : > { %s5085_s27 = scalar_select %p356_p1, %s4947_s20, %s358_s25  }
  0x10   : > { %p5087_p5 = por %p369_p2, %p368_p0  ;;  %p5091_p6 = por %p375_p4, %p374_p3 }
  0x11   : > { %5634 = sst [smem:[#allocation24_spill]] %s5085_s27  ;;  %p3832_p7 = scmp.ge.s32.totalorder %s4951_s21, 1 }
  0x12   : > { %s5635_s28 = scalar_select %p5087_p5, 1, 0 }
  0x13   : > { %s5637_s29 = scalar_select %p5091_p6, 1, 0 }
  0x14   : > { %5636 = sst [smem:[#allocation25_spill]] %s5635_s28  ;;  %p382_p8 = scmp.lt.s32.totalorder %s4951_s21, 3 }
  0x15   : > { %5638 = sst [smem:[#allocation26_spill]] %s5637_s29  ;;  %p5628_p9 = scmp.eq.s32.totalorder %s5070_s22, 0 }
  0x16   : > { %p5098_p10 = pnand %p3832_p7, %p382_p8  ;;  %s4953_s16 = smov [#allocation9]  }
  0x17   : > { %s416_s17 = sshll.u32 %s4953_s16, 4  ;;  %s4954_s25 = smov [#allocation12]   ;;  %s417_s17 = int_to_ptr.vmem [resolvable:$true] %s416_s17 }
  0x18   : > { %p4276_p11 = pneg %p5098_p10  ;;  %s448_s26 = sshll.u32 %s4954_s25, 4  ;;  %s449_s26 = int_to_ptr.vmem [resolvable:$true] %s448_s26 }
  0x19   : > { %s4760_s20 = scalar_lea.vmem %s417_s17, 1536  ;;  %p4768_p3 = scmp.lt.s32.totalorder %s417_s17, %s417_s17 }
  0x1a   : > { %p5106_p12 = pnand %p5628_p9, %p4276_p11  ;;  %p4761_p0 = scmp.ne.s32.totalorder %s417_s17, %s4760_s20 }
  0x1b   : > { %p4769_p4 = scmp.lt.s32.totalorder %s4760_s20, %s4760_s20 }
  0x1c   : > { %p5112_p13 = pneg %p5106_p12 }
  0x1d   : > { %p4770_p7 = por %p4769_p4, %p4768_p3 }
  0x1e   : > { %p4763_p1 = pnand %p4761_p0, %p5112_p13 }
  0x20   : > { %p4764_p2 = pneg %p4763_p1 }
  0x22   : > { %p4771_p8 = pnand %p4770_p7, %p4764_p2 }
  0x24   : > { %4774 = shalt.err (!%p4771_p8)
}
  0x25   : > { %s5624_s16 = smov 64   ;;  %s5626_s25 = smov 4  }
  0x26   : > { %4282 = dma.hbm_to_vmem [thread:$0]  (!%p5106_p12), %s5604_s5, 1536, %s417_s17, [#allocation10], %s5624_s16, %s5624_s16, %s5626_s25  }
  0x27   : > { %s4786_s18 = scalar_lea.vmem %s449_s26, 16384  ;;  %p4794_p3 = scmp.lt.s32.totalorder %s449_s26, %s449_s26 }
  0x28   : > { %p4787_p11 = scmp.ne.s32.totalorder %s449_s26, %s4786_s18  ;;  %p4795_p2 = scmp.lt.s32.totalorder %s4786_s18, %s4786_s18 }
  0x2a   : > { %p4789_p0 = pnand %p4787_p11, %p5112_p13  ;;  %p4796_p4 = por %p4795_p2, %p4794_p3 }
  0x2c   : > { %p4790_p1 = pneg %p4789_p0 }
  0x2e   : > { %p4797_p7 = pnand %p4796_p4, %p4790_p1 }
  0x30   : > { %4800 = shalt.err (!%p4797_p7)
}
  0x31   : > { %s4957_s20 = smov 256   ;;  %s4958_s21 = smov 16  }
  0x32   : > { %4288 = dma.hbm_to_vmem [thread:$0]  (!%p5106_p12), %s5608_s9, 16384, %s449_s26, [#allocation13], %s4957_s20, %s4957_s20, %s4958_s21  }
  0x33   : > { %s4959_s24 = smov [#allocation6]   ;;  %s4960_s17 = smov [#allocation11]  }
  0x34   : > { %s400_s29 = sshll.u32 %s4959_s24, 4  ;;  %s432_s16 = sshll.u32 %s4960_s17, 4  ;;  %s401_s29 = int_to_ptr.vmem [resolvable:$true] %s400_s29  ;;  %s433_s16 = int_to_ptr.vmem [resolvable:$true] %s432_s16 }
  0x35   : > { %s4812_s25 = scalar_lea.vmem %s401_s29, 768  ;;  %p4820_p1 = scmp.lt.s32.totalorder %s401_s29, %s401_s29 }
  0x36   : > { %p4813_p8 = scmp.ne.s32.totalorder %s401_s29, %s4812_s25  ;;  %p4821_p3 = scmp.lt.s32.totalorder %s4812_s25, %s4812_s25 }
  0x38   : > { %p4815_p11 = pnand %p4813_p8, %p5112_p13  ;;  %p4822_p2 = por %p4821_p3, %p4820_p1 }
  0x3a   : > { %p4816_p0 = pneg %p4815_p11 }
  0x3c   : > { %p4823_p4 = pnand %p4822_p2, %p4816_p0 }
  0x3e   : > { %4826 = shalt.err (!%p4823_p4)
}
  0x3f   : > { %s5642_s15 = smov 4   ;;  %s5643_s18 = smov 64  }
  0x40   : > { %4279 = dma.hbm_to_vmem [thread:$0]  (!%p5106_p12), %s5602_s3, 768, %s401_s29, [#allocation7], %s5643_s18, %s5643_s18, %s5642_s15  }
  0x41   : > { %s4838_s26 = scalar_lea.vmem %s433_s16, 6144  ;;  %p4846_p9 = scmp.lt.s32.totalorder %s433_s16, %s433_s16 }
  0x42   : > { %p4839_p7 = scmp.ne.s32.totalorder %s433_s16, %s4838_s26  ;;  %p4847_p6 = scmp.lt.s32.totalorder %s4838_s26, %s4838_s26 }
  0x44   : > { %p4841_p8 = pnand %p4839_p7, %p5112_p13  ;;  %p4848_p1 = por %p4847_p6, %p4846_p9 }
  0x46   : > { %p4842_p11 = pneg %p4841_p8 }
  0x48   : > { %p4849_p0 = pnand %p4848_p1, %p4842_p11 }
  0x4a   : > { %4852 = shalt.err (!%p4849_p0)
}
  0x4b   : > { %s4961_s25 = smov 128   ;;  %s4962_s20 = smov 8  }
  0x4c   : > { %4285 = dma.hbm_to_vmem [thread:$0]  (!%p5106_p12), %s5606_s7, 6144, %s433_s16, [#allocation10], %s4961_s25, %s4961_s25, %s4962_s20  }
  0x4d   : > { %s4963_s29 = smov [#allocation14]  }
  0x4e   : > { %s470_s21 = sshll.u32 %s4963_s29, 4  ;;  %s471_s21 = int_to_ptr.vmem [resolvable:$true] %s470_s21 }
  0x4f   : > { %s4864_s28 = scalar_lea.vmem %s471_s21, 2048  ;;  %p4872_p6 = scmp.lt.s32.totalorder %s471_s21, %s471_s21 }
  0x50   : > { %p4865_p3 = scmp.ne.s32.totalorder %s471_s21, %s4864_s28  ;;  %p4873_p9 = scmp.lt.s32.totalorder %s4864_s28, %s4864_s28 }
  0x52   : > { %p4867_p2 = pnand %p4865_p3, %p5112_p13  ;;  %p4874_p7 = por %p4873_p9, %p4872_p6 }
  0x54   : > { %p4868_p4 = pneg %p4867_p2 }
  0x56   : > { %p4875_p8 = pnand %p4874_p7, %p4868_p4 }
  0x58   : > { %4878 = shalt.err (!%p4875_p8)
}
  0x59   : > { %4291 = dma.hbm_to_vmem [thread:$0]  (!%p5106_p12), %s5612_s13, 2048, %s471_s21, [#allocation13], %s5643_s18, %s5643_s18, %s5642_s15  }
  0x5a   : > { %497 = sbr.rel (%p5098_p10) target bundleno = 1831 (0x727), region = 80  ;;  %p5644_p13 = scmp.eq.s32.totalorder (!%p5098_p10), %s5070_s22, 0 }
  0x5f   : > { %4922 = dma.done.wait (%p5644_p13), [#allocation7], 768   ;;  %p5645_p11 = pmov %p5644_p13 }
  0x61   : > { %4924 = vsyncadd (%p5645_p11), [#allocation7], 4294966528  ;;  %p5646_p1 = pmov %p5645_p11 }
  0x63   : > { %4926 = dma.done.wait (%p5646_p1), [#allocation10], 7680   ;;  %p5647_p0 = pmov %p5646_p1 }
  0x65   : > { %4928 = vsyncadd (%p5647_p0), [#allocation10], 4294959616  ;;  %p5648_p3 = pmov %p5647_p0 }
  0x66   : > { %p5649_p12 = pmov %p5647_p0 }
  0x67   : > { %4930 = dma.done.wait (%p5648_p3), [#allocation13], 18432  }
  0x68   : > { %4932 = vsyncadd (%p5649_p12), [#allocation13], 4294948864  ;;  %p560_p10 = scmp.lt.s32.totalorder %s5070_s22, 1  ;;  %vm601_vm0 = vcmask 1045504   ;;  %v4354_v0 = vld [vmem:[%s5600_s1] sm:$0x3f]   ;;  %v666_v15 = vlaneseq }
  0x69   : > { %vm594_vm1 = vcmask 97280   ;;  %4253 = vmatprep.subr.msk.bf16.mxu1 %vm601_vm0, %v4354_v0  ;;  %v603_v4 = vsel %vm601_vm0, %v4354_v0, 0  ;;  %v4355_v8 = vld [vmem:[#allocation6 + $0x18] sm:$0xff]   ;;  %v4356_v9 = vld [vmem:[#allocation6 + $0x8] sm:$0xff]   ;;  %v4964_v10 = vmov 0.0   ;;  %vm566_vm2 = vcmask 253952  }
  0x6a   : > { %s561_s27 = scalar_select %p560_p10, %s5070_s22, 1  ;;  %4188 = vmatpush3.bf16.msra.mxu1 %v603_v4  ;;  %572 = vst [vmem:[#allocation4] sm:$0x1] %v4964_v10  ;;  %573 = vst [vmem:[#allocation4 + $0x5] sm:$0x1] %v4964_v10  ;;  %4201 = vmatprep.subr.bf16.mxu0 %v4964_v10  ;;  %v4357_v11 = vld [vmem:[#allocation6 + $0x10] sm:$0xff]  }
  0x6b   : > { %4193 = vmatprep.subr.bf16.mxu1 %v4964_v10  ;;  %4202 = vmatpush3.bf16.msra.mxu0 %v4356_v9  ;;  %v4358_v12 = vld [vmem:[#allocation6] sm:$0xff]   ;;  %567 = vst.msk [vmem:[#allocation2] sm:$0x1] %vm566_vm2, %v4964_v10  ;;  %568 = vst.msk [vmem:[#allocation2 + $0x11] sm:$0x1] %vm566_vm2, %v4964_v10  ;;  %vm4965_vm3 = vmmov 0  }
  0x6c   : > { %s4137_s30 = sshll.u32 %s561_s27, 5  ;;  %4203 = vmatprep.subr.bf16.mxu0 %v4964_v10  ;;  %4205 = vmatprep.mubr.msk.bf16.mxu0 %vm4965_vm3, %v4964_v10  ;;  %v4966_v13 = vmov 1983009808   ;;  %v5196_v17 = vshrl.u32 %v666_v15, 7  ;;  %v5201_v18 = vld [vmem:[%s5601_s2] ss:$0 sm:$0xff] }
  0x6d   : > { %s564_s18 = scalar_lea.vmem %s5599_s0, %s4137_s30  ;;  %v664_v14 = vunpack.c.l.s4 %v4966_v13  ;;  %vm746_vm4 = vcmask 254976   ;;  %vm875_vm5 = vcmask 1041409   ;;  %vm877_vm6 = vcmask 1042434   ;;  %s558_s24 = sand.u32 1, %s4943_s19  }
  0x6e   : > { %v574_v1 = vld [vmem:[%s564_s18] sm:$0xff]  ;;  %v575_v2 = vld [vmem:[%s564_s18 + $0x8] sm:$0xff]  ;;  %v576_v3 = vld [vmem:[%s564_s18 + $0x10] sm:$0xff]  ;;  %vm879_vm7 = vcmask 1043459   ;;  %vm881_vm8 = vcmask 1044484   ;;  %vm883_vm9 = vcmask 1045509  }
  0x6f   : > { %v578_v5 = vpack.c.bf16 %v575_v2, %v574_v1  ;;  %v577_v6 = vld [vmem:[%s564_s18 + $0x18] sm:$0xff]  ;;  %4204 = vmatpush3.bf16.msra.mxu0 %v4358_v12  ;;  %v665_v16 = vunpack.c.0.s8 %v664_v14  ;;  %vm885_vm10 = vcmask 1046534   ;;  %vm887_vm11 = vcmask 1047559   ;;  %s4134_s28 = sshll.u32 %s5070_s22, 4  ;;  %s559_s26 = scalar_lea.vmem [#allocation15], %s558_s24 }
  0x70   : > { %v579_v7 = vpack.c.bf16 %v577_v6, %v576_v3  ;;  %4217 = vmatprep.subr.bf16.mxu0 %v4964_v10  ;;  %vm898_vm12 = vcmask 261120   ;;  %vm569_vm13 = vcmask 516096   ;;  %vm1149_vm14 = vcmask 517120   ;;  %s3726_s16 = sshll.u32 %s559_s26, 4  ;;  %s5651_s23 = sld [smem:[#allocation27_spill]]  ;;  %s3727_s16 = int_to_ptr.vmem [resolvable:$true] %s3726_s16 }
  0x71   : > { %4189 = vmatprep.mubr.msk.bf16.mxu1 %vm594_vm1, %v578_v5  ;;  %v5205_v21 = vsub.s32 %v665_v16, %v5196_v17  ;;  %570 = vst.msk [vmem:[#allocation3] sm:$0x1] %vm569_vm13, %v4964_v10  ;;  %571 = vst.msk [vmem:[#allocation3 + $0x9] sm:$0x1] %vm569_vm13, %v4964_v10  ;;  %vm1222_vm15 = vcmask 523264   ;;  %vm1489_vm0 = vcmask 1041408  }
  0x72   : > { %4190 = vmatmul.mubr.msk.bf16.vlgmr.msra.gmra.mxu1 %vm594_vm1, %v579_v7  ;;  %s3714_s18 = scalar_lea.sflag [#allocation8], %s558_s24  ;;  %s4879_s25 = scalar_lea.vmem %s3727_s16, 16 }
  0x73   : > { %4194 = vmatpush3.bf16.msra.mxu1 %v4355_v8  ;;  %4197 = vmatprep.mubr.msk.bf16.mxu1 %vm4965_vm3, %v4964_v10  ;;  %p4880_p2 = scmp.ne.s32.totalorder %s3727_s16, %s4879_s25  ;;  %s4968_s22 = smov [#allocation15]  }
  0x74   : > { %4195 = vmatprep.subr.bf16.mxu1 %v4964_v10  ;;  %s4883_s20 = sshll.u32 %s4968_s22, 4  ;;  %s4884_s20 = int_to_ptr.vmem [resolvable:$false] %s4883_s20 }
  0x75   : > { %p4881_p4 = pnand %p4880_p2, %p5087_p5  ;;  %s4885_s17 = scalar_lea.vmem %s4884_s20, 32 }
  0x76   : > { %s5564_s15 = scalar_lea.hbm %s5651_s23, %s4134_s28  ;;  %p4886_p9 = scmp.lt.s32.totalorder %s3727_s16, %s4884_s20 }
  0x77   : > { %4196 = vmatpush3.bf16.msra.mxu1 %v4357_v11  ;;  %p4882_p6 = pneg %p4881_p4  ;;  %p4887_p7 = scmp.lt.s32.totalorder %s4885_s17, %s4879_s25 }
  0x78   : > { %4209 = vmatprep.subr.bf16.mxu1 %v4964_v10 }
  0x79   : > { %p4888_p8 = por %p4887_p7, %p4886_p9 }
  0x7b   : > { %p4889_p13 = pnand %p4888_p8, %p4882_p6 }
 0x132   : > { %v4191_v19 = vpop.f32.mrf.mxu1 }
 0x133   : > { %v648_v20 = vadd.f32 %v4191_v19, %v5201_v18 }
 0x134   : > { %v639_v22 = vpop.f32.mrf.mxu1 }
 0x135   : > { %v656_v23 = vmax.f32 %v648_v20, 0.0  ;;  %v640_v24 = vadd.f32 %v5201_v18, %v639_v22 }
 0x136   : > { %v4192_v25 = vpop.f32.mrf.mxu1 }
 0x137   : > { %v696_v26 = vcombine.high %v656_v23, %v656_v23  ;;  %v703_v27 = vrot.slane %v656_v23, %v5205_v21  ;;  %v654_v28 = vmax.f32 %v640_v24, 0.0  ;;  %v651_v29 = vadd.f32 %v4192_v25, %v5201_v18 }
 0x138   : > { %v642_v20 = vpop.f32.mrf.mxu1 }
 0x139   : > { %v710_v30 = vrot.slane %v696_v26, %v5205_v21  ;;  %v711_v31 = vcombine.high %v703_v27, %v703_v27  ;;  %v803_v32 = vsel %vm746_vm4, %v703_v27, -inf  ;;  %v662_v33 = vcombine.high %v654_v28, %v654_v28 }
 0x13a   : > { %v804_v34 = vrot.slane %v803_v32, 4  ;;  %v669_v35 = vrot.slane %v654_v28, %v5205_v21  ;;  %v657_v36 = vmax.f32 %v651_v29, 0.0 }
 0x13b   : > { %v712_v37 = vcombine.high %v710_v30, %v710_v30  ;;  %v810_v38 = vsel %vm746_vm4, %v711_v31, -inf  ;;  %v817_v39 = vsel %vm746_vm4, %v710_v30, -inf  ;;  %v676_v40 = vrot.slane %v662_v33, %v5205_v21 }
 0x13c   : > { %v805_v41 = vmax.f32 %v803_v32, %v804_v34  ;;  %v811_v42 = vrot.slane %v810_v38, 4  ;;  %v818_v43 = vrot.slane %v817_v39, 4  ;;  %v677_v44 = vcombine.high %v669_v35, %v669_v35 }
 0x13d   : > { %v824_v45 = vsel %vm746_vm4, %v712_v37, -inf  ;;  %v678_v46 = vcombine.high %v676_v40, %v676_v40  ;;  %v747_v47 = vsel %vm746_vm4, %v669_v35, -inf  ;;  %v761_v48 = vsel %vm746_vm4, %v676_v40, -inf }
 0x13e   : > { %v806_v49 = vrot.slane %v805_v41, 2  ;;  %v812_v50 = vmax.f32 %v810_v38, %v811_v42  ;;  %v819_v51 = vmax.f32 %v817_v39, %v818_v43  ;;  %v825_v52 = vrot.slane %v824_v45, 4 }
 0x13f   : > { %v748_v53 = vrot.slane %v747_v47, 4  ;;  %v754_v54 = vsel %vm746_vm4, %v677_v44, -inf  ;;  %v762_v55 = vrot.slane %v761_v48, 4  ;;  %v768_v56 = vsel %vm746_vm4, %v678_v46, -inf }
 0x140   : > { %v807_v57 = vmax.f32 %v805_v41, %v806_v49  ;;  %v813_v58 = vrot.slane %v812_v50, 2  ;;  %v820_v59 = vrot.slane %v819_v51, 2  ;;  %v826_v60 = vmax.f32 %v824_v45, %v825_v52 }
 0x141   : > { %v749_v61 = vmax.f32 %v747_v47, %v748_v53  ;;  %v755_v62 = vrot.slane %v754_v54, 4  ;;  %v763_v63 = vmax.f32 %v761_v48, %v762_v55  ;;  %v769_v0 = vrot.slane %v768_v56, 4 }
 0x142   : > { %v808_v1 = vrot.slane %v807_v57, 1  ;;  %v814_v2 = vmax.f32 %v812_v50, %v813_v58  ;;  %v821_v3 = vmax.f32 %v819_v51, %v820_v59  ;;  %v827_v4 = vrot.slane %v826_v60, 2 }
 0x143   : > { %v750_v5 = vrot.slane %v749_v61, 2  ;;  %v756_v6 = vmax.f32 %v754_v54, %v755_v62  ;;  %v764_v7 = vrot.slane %v763_v63, 2  ;;  %v770_v8 = vmax.f32 %v768_v56, %v769_v0 }
 0x144   : > { %v815_v9 = vrot.slane %v814_v2, 1  ;;  %v822_v11 = vrot.slane %v821_v3, 1  ;;  %v828_v12 = vmax.f32 %v826_v60, %v827_v4  ;;  %v713_v19 = vcombine.high %v657_v36, %v657_v36 }
 0x145   : > { %v751_v13 = vmax.f32 %v749_v61, %v750_v5  ;;  %v757_v14 = vrot.slane %v756_v6, 2  ;;  %v765_v16 = vmax.f32 %v763_v63, %v764_v7  ;;  %v809_v22 = vmax.f32 %v807_v57, %v808_v1 }
 0x146   : > { %v816_v15 = vmax.f32 %v814_v2, %v815_v9  ;;  %v829_v23 = vrot.slane %v828_v12, 1  ;;  %v771_v25 = vrot.slane %v770_v8, 2  ;;  %v823_v26 = vmax.f32 %v821_v3, %v822_v11 }
 0x147   : > { %v758_v24 = vmax.f32 %v756_v6, %v757_v14  ;;  %v720_v27 = vrot.slane %v657_v36, %v5205_v21  ;;  %v727_v28 = vrot.slane %v713_v19, %v5205_v21  ;;  %v752_v30 = vrot.slane %v751_v13, 1 }
 0x148   : > { %v889_v29 = vsel %vm875_vm5, %v816_v15, %v809_v22  ;;  %v643_v32 = vadd.f32 %v5201_v18, %v642_v20  ;;  %v766_v33 = vrot.slane %v765_v16, 1  ;;  %v830_v38 = vmax.f32 %v828_v12, %v829_v23 }
 0x149   : > { %v759_v31 = vrot.slane %v758_v24, 1  ;;  %v728_v34 = vcombine.high %v720_v27, %v720_v27  ;;  %v729_v35 = vcombine.high %v727_v28, %v727_v28  ;;  %v831_v37 = vsel %vm746_vm4, %v720_v27, -inf }
 0x14a   : > { %v772_v39 = vmax.f32 %v770_v8, %v771_v25  ;;  %v832_v40 = vrot.slane %v831_v37, 4  ;;  %v845_v41 = vsel %vm746_vm4, %v727_v28, -inf  ;;  %v890_v36 = vsel %vm877_vm6, %v823_v26, %v889_v29 }
 0x14b   : > { %v838_v42 = vsel %vm746_vm4, %v728_v34, -inf  ;;  %v846_v43 = vrot.slane %v845_v41, 4  ;;  %v852_v44 = vsel %vm746_vm4, %v729_v35, -inf  ;;  %v760_v45 = vmax.f32 %v758_v24, %v759_v31 }
 0x14c   : > { %v833_v18 = vmax.f32 %v831_v37, %v832_v40  ;;  %v839_v46 = vrot.slane %v838_v42, 4  ;;  %v853_v47 = vrot.slane %v852_v44, 4  ;;  %v753_v48 = vmax.f32 %v751_v13, %v752_v30 }
 0x14d   : > { %v767_v49 = vmax.f32 %v765_v16, %v766_v33  ;;  %v847_v50 = vmax.f32 %v845_v41, %v846_v43  ;;  %v655_v51 = vmax.f32 %v643_v32, 0.0  ;;  %v773_v52 = vrot.slane %v772_v39, 1 }
 0x14e   : > { %v834_v53 = vrot.slane %v833_v18, 2  ;;  %v840_v54 = vmax.f32 %v838_v42, %v839_v46  ;;  %v854_v55 = vmax.f32 %v852_v44, %v853_v47  ;;  %v891_v57 = vsel %vm879_vm7, %v830_v38, %v890_v36 }
 0x14f   : > { %v848_v56 = vrot.slane %v847_v50, 2  ;;  %v679_v58 = vcombine.high %v655_v51, %v655_v51  ;;  %v686_v59 = vrot.slane %v655_v51, %v5205_v21  ;;  %v876_v60 = vsel %vm875_vm5, %v760_v45, %v753_v48 }
 0x150   : > { %v835_v61 = vmax.f32 %v833_v18, %v834_v53  ;;  %v841_v62 = vrot.slane %v840_v54, 2  ;;  %v855_v63 = vrot.slane %v854_v55, 2  ;;  %v774_v28 = vmax.f32 %v772_v39, %v773_v52 }
 0x151   : > { %v849_v0 = vmax.f32 %v847_v50, %v848_v56  ;;  %v693_v1 = vrot.slane %v679_v58, %v5205_v21  ;;  %v694_v2 = vcombine.high %v686_v59, %v686_v59  ;;  %v775_v3 = vsel %vm746_vm4, %v686_v59, -inf }
 0x152   : > { %v836_v4 = vrot.slane %v835_v61, 1  ;;  %v842_v5 = vmax.f32 %v840_v54, %v841_v62  ;;  %v856_v6 = vmax.f32 %v854_v55, %v855_v63  ;;  %v776_v7 = vrot.slane %v775_v3, 4  ;;  %v4360_v63 = vld [vmem:[#allocation6 + $0x20] sm:$0xff]  }
 0x153   : > { %v850_v8 = vrot.slane %v849_v0, 1  ;;  %v695_v9 = vcombine.high %v693_v1, %v693_v1  ;;  %v782_v11 = vsel %vm746_vm4, %v694_v2, -inf  ;;  %v789_v12 = vsel %vm746_vm4, %v693_v1, -inf }
 0x154   : > { %v837_v13 = vmax.f32 %v835_v61, %v836_v4  ;;  %v843_v14 = vrot.slane %v842_v5, 1  ;;  %v857_v15 = vrot.slane %v856_v6, 1  ;;  %v777_v16 = vmax.f32 %v775_v3, %v776_v7  ;;  %v4361_v3 = vld [vmem:[#allocation9 + $0x38] sm:$0xff]   ;;  %v4365_v7 = vld [vmem:[#allocation9 + $0x28] sm:$0xff]  }
 0x155   : > { %v851_v19 = vmax.f32 %v849_v0, %v850_v8  ;;  %v783_v20 = vrot.slane %v782_v11, 4  ;;  %v790_v22 = vrot.slane %v789_v12, 4  ;;  %v796_v23 = vsel %vm746_vm4, %v695_v9, -inf  ;;  %v4362_v4 = vld [vmem:[#allocation9 + $0x18] sm:$0xff]   ;;  %v4366_v8 = vld [vmem:[#allocation9 + $0x8] sm:$0xff]   ;;  %v4367_v9 = vld [vmem:[#allocation9 + $0x20] sm:$0xff]  }
 0x156   : > { %v844_v24 = vmax.f32 %v842_v5, %v843_v14  ;;  %v858_v25 = vmax.f32 %v856_v6, %v857_v15  ;;  %v892_v26 = vsel %vm881_vm8, %v837_v13, %v891_v57  ;;  %v778_v27 = vrot.slane %v777_v16, 2  ;;  %v4359_v57 = vld [vmem:[#allocation6 + $0x28] sm:$0xff]   ;;  %v4363_v5 = vld [vmem:[#allocation9 + $0x30] sm:$0xff]  }
 0x157   : > { %v784_v29 = vmax.f32 %v782_v11, %v783_v20  ;;  %v791_v30 = vmax.f32 %v789_v12, %v790_v22  ;;  %v797_v31 = vrot.slane %v796_v23, 4  ;;  %v878_v32 = vsel %vm877_vm6, %v767_v49, %v876_v60  ;;  %v4364_v6 = vld [vmem:[#allocation9 + $0x10] sm:$0xff]   ;;  %v4368_v11 = vld [vmem:[#allocation9] sm:$0xff]  }
 0x158   : > { %v893_v33 = vsel %vm883_vm9, %v844_v24, %v892_v26  ;;  %v779_v34 = vmax.f32 %v777_v16, %v778_v27  ;;  %v880_v44 = vsel %vm879_vm7, %v774_v28, %v878_v32 }
 0x159   : > { %v785_v35 = vrot.slane %v784_v29, 2  ;;  %v792_v37 = vrot.slane %v791_v30, 2  ;;  %v798_v38 = vmax.f32 %v796_v23, %v797_v31  ;;  %v894_v40 = vsel %vm885_vm10, %v851_v19, %v893_v33 }
 0x15a   : > { %v780_v41 = vrot.slane %v779_v34, 1  ;;  %v895_v36 = vsel %vm887_vm11, %v858_v25, %v894_v40  ;;  %v3860_v25 = vld [vmem:[%s5603_s4] ss:$0 sm:$0xff] }
 0x15b   : > { %v786_v42 = vmax.f32 %v784_v29, %v785_v35  ;;  %v793_v43 = vmax.f32 %v791_v30, %v792_v37  ;;  %v799_v39 = vrot.slane %v798_v38, 2  ;;  %900 = vst.msk [vmem:[#allocation2 + $0x9] sm:$0xff] %vm898_vm12, %v895_v36 }
 0x15c   : > { %v781_v45 = vmax.f32 %v779_v34, %v780_v41 }
 0x15d   : > { %v787_v18 = vrot.slane %v786_v42, 1  ;;  %v794_v46 = vrot.slane %v793_v43, 1  ;;  %v800_v47 = vmax.f32 %v798_v38, %v799_v39 }
 0x15e   : > { %v882_v48 = vsel %vm881_vm8, %v781_v45, %v880_v44 }
 0x15f   : > { %v788_v49 = vmax.f32 %v786_v42, %v787_v18  ;;  %v795_v50 = vmax.f32 %v793_v43, %v794_v46  ;;  %v801_v51 = vrot.slane %v800_v47, 1 }
 0x161   : > { %v802_v52 = vmax.f32 %v800_v47, %v801_v51  ;;  %v884_v53 = vsel %vm883_vm9, %v788_v49, %v882_v48 }
 0x162   : > { %v886_v54 = vsel %vm885_vm10, %v795_v50, %v884_v53  ;;  %v909_v56 = vld [vmem:[#allocation2 + $0x9] sm:$0xff] }
 0x163   : > { %v888_v55 = vsel %vm887_vm11, %v802_v52, %v886_v54  ;;  %v1029_v1 = vld [vmem:[#allocation2 + $0xa] sm:$0xff] }
 0x164   : > { %899 = vst.msk [vmem:[#allocation2 + $0x1] sm:$0xff] %vm898_vm12, %v888_v55 }
 0x16b   : > { %v908_v58 = vld [vmem:[#allocation2 + $0x1] sm:$0xff] }
 0x16c   : > { %v901_v59 = vld [vmem:[#allocation2] sm:$0xff]  ;;  %v902_v60 = vld [vmem:[#allocation2 + $0x8] sm:$0xff]  ;;  %v910_v61 = vpack.c.bf16 %v909_v56, %v908_v58 }
 0x16d   : > { %v903_v62 = vpack.c.bf16 %v902_v60, %v901_v59  ;;  %v1028_v0 = vld [vmem:[#allocation2 + $0x2] sm:$0xff] }
 0x16e   : > { %4198 = vmatmul.mubr.msk.bf16.vlgmr.msra.gmra.mxu1 %vm898_vm12, %v910_v61  ;;  %v1030_v2 = vpack.c.bf16 %v1029_v1, %v1028_v0 }
 0x16f   : > { %4206 = vmatmul.mubr.msk.bf16.vlgmr.msra.gmra.mxu0 %vm898_vm12, %v903_v62  ;;  %4210 = vmatpush3.bf16.msra.mxu1 %v4359_v57 }
 0x170   : > { %4213 = vmatprep.mubr.msk.bf16.mxu1 %vm4965_vm3, %v4964_v10  ;;  %4211 = vmatprep.subr.bf16.mxu1 %v4964_v10 }
 0x171   : > { %4225 = vmatprep.mubr.msk.bf16.mxu0 %vm4965_vm3, %v4964_v10  ;;  %4218 = vmatpush3.bf16.msra.mxu0 %v4361_v3 }
 0x172   : > { %4219 = vmatprep.subr.bf16.mxu0 %v4964_v10 }
 0x173   : > { %4212 = vmatpush3.bf16.msra.mxu1 %v4360_v63 }
 0x174   : > { %4229 = vmatprep.subr.bf16.mxu1 %v4964_v10 }
 0x175   : > { %4220 = vmatpush3.bf16.msra.mxu0 %v4363_v5 }
 0x176   : > { %4214 = vmatmul.mubr.msk.bf16.vlgmr.msra.gmra.mxu1 %vm898_vm12, %v1030_v2  ;;  %4221 = vmatprep.subr.bf16.mxu0 %v4964_v10 }
 0x177   : > { %4237 = vmatprep.mubr.msk.bf16.mxu1 %vm4965_vm3, %v4964_v10  ;;  %4230 = vmatpush3.bf16.msra.mxu1 %v4362_v4 }
 0x178   : > { %4231 = vmatprep.subr.bf16.mxu1 %v4964_v10 }
 0x179   : > { %4222 = vmatpush3.bf16.msra.mxu0 %v4365_v7 }
 0x17a   : > { %4223 = vmatprep.subr.bf16.mxu0 %v4964_v10 }
 0x17b   : > { %4232 = vmatpush3.bf16.msra.mxu1 %v4364_v6 }
 0x17c   : > { %4233 = vmatprep.subr.bf16.mxu1 %v4964_v10 }
 0x17d   : > { %4224 = vmatpush3.bf16.msra.mxu0 %v4367_v9 }
 0x17e   : > { %4241 = vmatprep.subr.bf16.mxu0 %v4964_v10 }
 0x17f   : > { %4234 = vmatpush3.bf16.msra.mxu1 %v4366_v8 }
 0x180   : > { %4235 = vmatprep.subr.bf16.mxu1 %v4964_v10 }
 0x183   : > { %4236 = vmatpush3.bf16.msra.mxu1 %v4368_v11 }
 0x22e   : > { %v965_v12 = vpop.f32.mrf.mxu1 }
 0x22f   : > { %v1021_v13 = vpop.f32.mrf.mxu0 }
 0x230   : > { %v4199_v14 = vpop.f32.mrf.mxu1  ;;  %v1022_v23 = vadd.f32 %v1021_v13, %v965_v12 }
 0x231   : > { %v4207_v15 = vpop.f32.mrf.mxu0 }
 0x232   : > { %v968_v16 = vpop.f32.mrf.mxu1 }
 0x233   : > { %v1024_v19 = vpop.f32.mrf.mxu0 }
 0x234   : > { %v4200_v20 = vpop.f32.mrf.mxu1  ;;  %v1025_v28 = vadd.f32 %v1024_v19, %v968_v16 }
 0x235   : > { %v4208_v22 = vpop.f32.mrf.mxu0 }
 0x236   : > { %v1085_v24 = vpop.f32.mrf.mxu1 }
 0x237   : > { %v1092_v26 = vadd.f32 %v1085_v24, %v1022_v23 }
 0x238   : > { %v4215_v27 = vpop.f32.mrf.mxu1 }
 0x239   : > { %v1101_v29 = vadd.f32 %v3860_v25, %v1092_v26 }
 0x23a   : > { %v1088_v30 = vpop.f32.mrf.mxu1 }
 0x23b   : > { %v1103_v31 = vmax.f32 %v1101_v29, 0.0  ;;  %v1093_v32 = vadd.f32 %v1088_v30, %v1025_v28 }
 0x23c   : > { %v4216_v33 = vpop.f32.mrf.mxu1 }
 0x23d   : > { %v1107_v34 = vcombine.high %v1103_v31, %v1103_v31  ;;  %v1114_v35 = vrot.slane %v1103_v31, %v5205_v21  ;;  %v1102_v37 = vadd.f32 %v3860_v25, %v1093_v32 }
 0x23f   : > { %v1121_v38 = vrot.slane %v1107_v34, %v5205_v21  ;;  %v1122_v40 = vcombine.high %v1114_v35, %v1114_v35  ;;  %v1150_v41 = vsel %vm1149_vm14, %v1114_v35, -inf  ;;  %v1104_v36 = vmax.f32 %v1102_v37, 0.0 }
 0x240   : > { %v1151_v42 = vrot.slane %v1150_v41, 4 }
 0x241   : > { %v1123_v43 = vcombine.high %v1121_v38, %v1121_v38  ;;  %v1157_v39 = vsel %vm1149_vm14, %v1122_v40, -inf  ;;  %v1164_v44 = vsel %vm1149_vm14, %v1121_v38, -inf  ;;  %v1124_v45 = vcombine.high %v1104_v36, %v1104_v36 }
 0x242   : > { %v1152_v18 = vmax.f32 %v1150_v41, %v1151_v42  ;;  %v1158_v46 = vrot.slane %v1157_v39, 4  ;;  %v1165_v47 = vrot.slane %v1164_v44, 4  ;;  %v1131_v48 = vrot.slane %v1104_v36, %v5205_v21 }
 0x243   : > { %v1171_v49 = vsel %vm1149_vm14, %v1123_v43, -inf  ;;  %v1138_v50 = vrot.slane %v1124_v45, %v5205_v21 }
 0x244   : > { %v1153_v51 = vrot.slane %v1152_v18, 2  ;;  %v1159_v52 = vmax.f32 %v1157_v39, %v1158_v46  ;;  %v1166_v53 = vmax.f32 %v1164_v44, %v1165_v47  ;;  %v1172_v54 = vrot.slane %v1171_v49, 4 }
 0x245   : > { %v1139_v55 = vcombine.high %v1131_v48, %v1131_v48  ;;  %v1140_v56 = vcombine.high %v1138_v50, %v1138_v50  ;;  %v1178_v57 = vsel %vm1149_vm14, %v1131_v48, -inf  ;;  %v1192_v58 = vsel %vm1149_vm14, %v1138_v50, -inf }
 0x246   : > { %v1154_v59 = vmax.f32 %v1152_v18, %v1153_v51  ;;  %v1160_v60 = vrot.slane %v1159_v52, 2  ;;  %v1167_v61 = vrot.slane %v1166_v53, 2  ;;  %v1173_v62 = vmax.f32 %v1171_v49, %v1172_v54  ;;  %v4369_v49 = vld [vmem:[#allocation9 + $0x58] sm:$0xff]   ;;  %v4372_v54 = vld [vmem:[#allocation9 + $0x40] sm:$0xff]  }
 0x247   : > { %v1179_v63 = vrot.slane %v1178_v57, 4  ;;  %v1185_v0 = vsel %vm1149_vm14, %v1139_v55, -inf  ;;  %v1193_v1 = vrot.slane %v1192_v58, 4  ;;  %v1199_v2 = vsel %vm1149_vm14, %v1140_v56, -inf }
 0x248   : > { %v1155_v3 = vrot.slane %v1154_v59, 1  ;;  %v1161_v4 = vmax.f32 %v1159_v52, %v1160_v60  ;;  %v1168_v5 = vmax.f32 %v1166_v53, %v1167_v61  ;;  %v1174_v6 = vrot.slane %v1173_v62, 2  ;;  %v4370_v52 = vld [vmem:[#allocation9 + $0x50] sm:$0xff]   ;;  %v4371_v53 = vld [vmem:[#allocation9 + $0x48] sm:$0xff]  }
 0x249   : > { %v1180_v7 = vmax.f32 %v1178_v57, %v1179_v63  ;;  %v1186_v8 = vrot.slane %v1185_v0, 4  ;;  %v1194_v9 = vmax.f32 %v1192_v58, %v1193_v1  ;;  %v1200_v11 = vrot.slane %v1199_v2, 4  ;;  %v4375_v57 = vld [vmem:[#allocation11 + $0xf4] ss:$8 sps:$4 sm:$0xff]   ;;  %v4373_v58 = vld [vmem:[#allocation11 + $0xf0] ss:$8 sps:$4 sm:$0xff]  }
 0x24a   : > { %v1162_v12 = vrot.slane %v1161_v4, 1  ;;  %v1169_v13 = vrot.slane %v1168_v5, 1  ;;  %v1175_v14 = vmax.f32 %v1173_v62, %v1174_v6  ;;  %v1156_v22 = vmax.f32 %v1154_v59, %v1155_v3  ;;  %v4378_v59 = vld [vmem:[#allocation11 + $0x74] ss:$8 sps:$4 sm:$0xff]   ;;  %1644 = vmatprep.subr.bf16.mxu1 %v4375_v57  ;;  %v4376_v60 = vld [vmem:[#allocation11 + $0x70] ss:$8 sps:$4 sm:$0xff]  }
 0x24b   : > { %v1181_v15 = vrot.slane %v1180_v7, 2  ;;  %v1187_v16 = vmax.f32 %v1185_v0, %v1186_v8  ;;  %v1195_v19 = vrot.slane %v1194_v9, 2  ;;  %v1201_v20 = vmax.f32 %v1199_v2, %v1200_v11  ;;  %v4381_v61 = vld [vmem:[#allocation11 + $0xe4] ss:$8 sps:$4 sm:$0xff]   ;;  %v4379_v62 = vld [vmem:[#allocation11 + $0xe0] ss:$8 sps:$4 sm:$0xff]  }
 0x24c   : > { %v1163_v23 = vmax.f32 %v1161_v4, %v1162_v12  ;;  %v1170_v24 = vmax.f32 %v1168_v5, %v1169_v13  ;;  %v1176_v25 = vrot.slane %v1175_v14, 1  ;;  %v4384_v63 = vld [vmem:[#allocation11 + $0x64] ss:$8 sps:$4 sm:$0xff]   ;;  %v4382_v0 = vld [vmem:[#allocation11 + $0x60] ss:$8 sps:$4 sm:$0xff]  }
 0x24d   : > { %v1182_v26 = vmax.f32 %v1180_v7, %v1181_v15  ;;  %v1188_v27 = vrot.slane %v1187_v16, 2  ;;  %v1196_v28 = vmax.f32 %v1194_v9, %v1195_v19  ;;  %v1202_v29 = vrot.slane %v1201_v20, 2  ;;  %v4385_v1 = vld [vmem:[#allocation11 + $0xd0] ss:$8 sps:$4 sm:$0xff]   ;;  %v4390_v2 = vld [vmem:[#allocation11 + $0x54] ss:$8 sps:$4 sm:$0xff]  }
 0x24e   : > { %v1177_v30 = vmax.f32 %v1175_v14, %v1176_v25  ;;  %v1214_v31 = vsel %vm875_vm5, %v1163_v23, %v1156_v22  ;;  %v4388_v3 = vld [vmem:[#allocation11 + $0x50] ss:$8 sps:$4 sm:$0xff]   ;;  %v4393_v4 = vld [vmem:[#allocation11 + $0xc4] ss:$8 sps:$4 sm:$0xff]   ;;  %v4391_v5 = vld [vmem:[#allocation11 + $0xc0] ss:$8 sps:$4 sm:$0xff]  }
 0x24f   : > { %v1215_v32 = vsel %vm877_vm6, %v1170_v24, %v1214_v31  ;;  %v1183_v33 = vrot.slane %v1182_v26, 1  ;;  %v1189_v34 = vmax.f32 %v1187_v16, %v1188_v27  ;;  %v1197_v35 = vrot.slane %v1196_v28, 1  ;;  %v4396_v6 = vld [vmem:[#allocation11 + $0x44] ss:$8 sps:$4 sm:$0xff]   ;;  %v4394_v7 = vld [vmem:[#allocation11 + $0x40] ss:$8 sps:$4 sm:$0xff]  }
 0x250   : > { %v1203_v37 = vmax.f32 %v1201_v20, %v1202_v29  ;;  %v1216_v38 = vsel %vm879_vm7, %v1177_v30, %v1215_v32  ;;  %v4399_v8 = vld [vmem:[#allocation11 + $0xb4] ss:$8 sps:$4 sm:$0xff]   ;;  %v4397_v9 = vld [vmem:[#allocation11 + $0xb0] ss:$8 sps:$4 sm:$0xff]   ;;  %v4405_v13 = vld [vmem:[#allocation11 + $0xa4] ss:$8 sps:$4 sm:$0xff]  }
 0x251   : > { %v1184_v40 = vmax.f32 %v1182_v26, %v1183_v33  ;;  %v1190_v41 = vrot.slane %v1189_v34, 1  ;;  %v1198_v36 = vmax.f32 %v1196_v28, %v1197_v35  ;;  %v4402_v11 = vld [vmem:[#allocation11 + $0x34] ss:$8 sps:$4 sm:$0xff]   ;;  %v4400_v12 = vld [vmem:[#allocation11 + $0x30] ss:$8 sps:$4 sm:$0xff]   ;;  %v4967_v29 = vmov 0  }
 0x252   : > { %v1204_v42 = vrot.slane %v1203_v37, 1  ;;  %v4403_v14 = vld [vmem:[#allocation11 + $0xa0] ss:$8 sps:$4 sm:$0xff]   ;;  %v4408_v15 = vld [vmem:[#allocation11 + $0x24] ss:$8 sps:$4 sm:$0xff]  }
 0x253   : > { %v1191_v43 = vmax.f32 %v1189_v34, %v1190_v41  ;;  %v1217_v39 = vsel %vm881_vm8, %v1184_v40, %v1216_v38  ;;  %v4406_v16 = vld [vmem:[#allocation11 + $0x20] ss:$8 sps:$4 sm:$0xff]   ;;  %v4411_v19 = vld [vmem:[#allocation11 + $0x94] ss:$8 sps:$4 sm:$0xff]   ;;  %v4409_v20 = vld [vmem:[#allocation11 + $0x90] ss:$8 sps:$4 sm:$0xff]  }
 0x254   : > { %v1205_v44 = vmax.f32 %v1203_v37, %v1204_v42  ;;  %v4412_v22 = vld [vmem:[#allocation11 + $0x10] ss:$8 sps:$4 sm:$0xff]   ;;  %v4414_v23 = vld [vmem:[#allocation11 + $0x14] ss:$8 sps:$4 sm:$0xff]   ;;  %v4417_v24 = vld [vmem:[#allocation11 + $0x84] ss:$8 sps:$4 sm:$0xff]  }
 0x255   : > { %v1218_v45 = vsel %vm883_vm9, %v1191_v43, %v1217_v39  ;;  %v4415_v25 = vld [vmem:[#allocation11 + $0x80] ss:$8 sps:$4 sm:$0xff]   ;;  %v4420_v26 = vld [vmem:[#allocation11 + $0x4] ss:$8 sps:$4 sm:$0xff]   ;;  %v4423_v28 = vld [vmem:[#allocation11 + $0x174] ss:$8 sps:$4 sm:$0xff]  }
 0x256   : > { %v1219_v18 = vsel %vm885_vm10, %v1198_v36, %v1218_v45  ;;  %v4418_v27 = vld [vmem:[#allocation11] ss:$8 sps:$4 sm:$0xff]   ;;  %v3876_v36 = vld [vmem:[%s5605_s6] ss:$0 sm:$0xff] }
 0x257   : > { %v1220_v46 = vsel %vm887_vm11, %v1205_v44, %v1219_v18 }
 0x258   : > { %1223 = vst.msk [vmem:[#allocation3 + $0x1] sm:$0xff] %vm1222_vm15, %v1220_v46 }
 0x25f   : > { %v1234_v47 = vld [vmem:[#allocation3 + $0x1] sm:$0xff] }
 0x260   : > { %v1224_v48 = vld [vmem:[#allocation3] sm:$0xff]  ;;  %v1235_v50 = vpack.c.bf16 %v1234_v47, %v1234_v47 }
 0x261   : > { %v1225_v51 = vpack.c.bf16 %v1224_v48, %v1224_v48  ;;  %v1379_v55 = vld [vmem:[#allocation3 + $0x2] sm:$0xff] }
 0x262   : > { %4226 = vmatmul.mubr.msk.bf16.vlgmr.msra.gmra.mxu0 %vm1222_vm15, %v1235_v50  ;;  %v1380_v56 = vpack.c.bf16 %v1379_v55, %v1379_v55 }
 0x263   : > { %4238 = vmatmul.mubr.msk.bf16.vlgmr.msra.gmra.mxu1 %vm1222_vm15, %v1225_v51  ;;  %4242 = vmatpush3.bf16.msra.mxu0 %v4369_v49 }
 0x264   : > { %4249 = vmatprep.mubr.msk.bf16.mxu0 %vm4965_vm3, %v4964_v10  ;;  %4243 = vmatprep.subr.bf16.mxu0 %v4964_v10 }
 0x265   : > { %1645 = vmatpush1.bf16.msra.mxu1 %v4373_v58  ;;  %1676 = vmatprep.mubr.bf16.mxu1 %v4967_v29 }
 0x266   : > { %1646 = vmatprep.subr.bf16.mxu1 %v4381_v61 }
 0x267   : > { %4244 = vmatpush3.bf16.msra.mxu0 %v4370_v52 }
 0x268   : > { %4245 = vmatprep.subr.bf16.mxu0 %v4964_v10 }
 0x269   : > { %1647 = vmatpush1.bf16.msra.mxu1 %v4379_v62 }
 0x26b   : > { %4246 = vmatpush3.bf16.msra.mxu0 %v4371_v53 }
 0x26c   : > { %4247 = vmatprep.subr.bf16.mxu0 %v4964_v10  ;;  %v4387_v10 = vld [vmem:[#allocation11 + $0xd4] ss:$8 sps:$4 sm:$0xff]  }
 0x26d   : > { %1648 = vmatprep.subr.bf16.mxu1 %v4387_v10 }
 0x26e   : > { %1649 = vmatpush1.bf16.msra.mxu1 %v4385_v1 }
 0x26f   : > { %4248 = vmatpush3.bf16.msra.mxu0 %v4372_v54  ;;  %1650 = vmatprep.subr.bf16.mxu1 %v4393_v4 }
 0x270   : > { %1765 = vmatprep.subr.bf16.mxu0 %v4378_v59 }
 0x272   : > { %4250 = vmatmul.mubr.msk.bf16.vlgmr.msra.gmra.mxu0 %vm1222_vm15, %v1380_v56  ;;  %1651 = vmatpush1.bf16.msra.mxu1 %v4391_v5 }
 0x273   : > { %1766 = vmatpush1.bf16.msra.mxu0 %v4376_v60  ;;  %1652 = vmatprep.subr.bf16.mxu1 %v4399_v8 }
 0x274   : > { %1767 = vmatprep.subr.bf16.mxu0 %v4384_v63  ;;  %1797 = vmatprep.mubr.bf16.mxu0 %v4967_v29 }
 0x276   : > { %1653 = vmatpush1.bf16.msra.mxu1 %v4397_v9 }
 0x277   : > { %1768 = vmatpush1.bf16.msra.mxu0 %v4382_v0  ;;  %1654 = vmatprep.subr.bf16.mxu1 %v4405_v13 }
 0x278   : > { %1769 = vmatprep.subr.bf16.mxu0 %v4390_v2 }
 0x27a   : > { %1655 = vmatpush1.bf16.msra.mxu1 %v4403_v14 }
 0x27b   : > { %1770 = vmatpush1.bf16.msra.mxu0 %v4388_v3  ;;  %1656 = vmatprep.subr.bf16.mxu1 %v4411_v19 }
 0x27c   : > { %1771 = vmatprep.subr.bf16.mxu0 %v4396_v6 }
 0x27e   : > { %1657 = vmatpush1.bf16.msra.mxu1 %v4409_v20  ;;  %v4421_v20 = vld [vmem:[#allocation11 + $0x170] ss:$8 sps:$4 sm:$0xff]  }
 0x27f   : > { %1772 = vmatpush1.bf16.msra.mxu0 %v4394_v7  ;;  %1658 = vmatprep.subr.bf16.mxu1 %v4417_v24 }
 0x280   : > { %1773 = vmatprep.subr.bf16.mxu0 %v4402_v11 }
 0x282   : > { %1659 = vmatpush1.bf16.msra.mxu1 %v4415_v25 }
 0x283   : > { %1774 = vmatpush1.bf16.msra.mxu0 %v4400_v12  ;;  %1905 = vmatprep.subr.bf16.mxu1 %v4423_v28  ;;  %v4429_v28 = vld [vmem:[#allocation11 + $0x154] ss:$8 sps:$4 sm:$0xff]  }
 0x284   : > { %1775 = vmatprep.subr.bf16.mxu0 %v4408_v15 }
 0x287   : > { %1776 = vmatpush1.bf16.msra.mxu0 %v4406_v16 }
 0x288   : > { %1777 = vmatprep.subr.bf16.mxu0 %v4414_v23 }
 0x28b   : > { %1778 = vmatpush1.bf16.msra.mxu0 %v4412_v22 }
 0x28c   : > { %1779 = vmatprep.subr.bf16.mxu0 %v4420_v26  ;;  %v4426_v26 = vld [vmem:[#allocation11 + $0x164] ss:$8 sps:$4 sm:$0xff]  }
 0x28f   : > { %1780 = vmatpush1.bf16.msra.mxu0 %v4418_v27  ;;  %v4424_v27 = vld [vmem:[#allocation11 + $0x160] ss:$8 sps:$4 sm:$0xff]  }
 0x322   : > { %v1306_v30 = vpop.f32.mrf.mxu0 }
 0x323   : > { %v1373_v31 = vpop.f32.mrf.mxu1 }
 0x324   : > { %v4227_v32 = vpop.f32.mrf.mxu0  ;;  %v1374_v40 = vadd.f32 %v1373_v31, %v1306_v30  ;;  %v4427_v30 = vld [vmem:[#allocation11 + $0x150] ss:$8 sps:$4 sm:$0xff]   ;;  %v4432_v31 = vld [vmem:[#allocation11 + $0x144] ss:$8 sps:$4 sm:$0xff]  }
 0x325   : > { %v4239_v33 = vpop.f32.mrf.mxu1  ;;  %v4430_v32 = vld [vmem:[#allocation11 + $0x140] ss:$8 sps:$4 sm:$0xff]  }
 0x326   : > { %v1309_v34 = vpop.f32.mrf.mxu0  ;;  %v4435_v33 = vld [vmem:[#allocation11 + $0x134] ss:$8 sps:$4 sm:$0xff]  }
 0x327   : > { %v1376_v35 = vpop.f32.mrf.mxu1  ;;  %v4433_v34 = vld [vmem:[#allocation11 + $0x130] ss:$8 sps:$4 sm:$0xff]  }
 0x328   : > { %v4228_v37 = vpop.f32.mrf.mxu0  ;;  %v4438_v35 = vld [vmem:[#allocation11 + $0x124] ss:$8 sps:$4 sm:$0xff]  }
 0x329   : > { %v4240_v38 = vpop.f32.mrf.mxu1  ;;  %v4436_v37 = vld [vmem:[#allocation11 + $0x120] ss:$8 sps:$4 sm:$0xff]  }
 0x32a   : > { %v4441_v38 = vld [vmem:[#allocation11 + $0x114] ss:$8 sps:$4 sm:$0xff]  }
 0x332   : > { %v1451_v41 = vpop.f32.mrf.mxu0 }
 0x333   : > { %v1457_v42 = vadd.f32 %v1451_v41, %v1374_v40  ;;  %v4444_v40 = vld [vmem:[#allocation11 + $0x104] ss:$8 sps:$4 sm:$0xff]   ;;  %v4442_v41 = vld [vmem:[#allocation11 + $0x100] ss:$8 sps:$4 sm:$0xff]  }
 0x334   : > { %v4251_v43 = vpop.f32.mrf.mxu0 }
 0x335   : > { %v1465_v39 = vadd.f32 %v3876_v36, %v1457_v42  ;;  %v4447_v43 = vld [vmem:[#allocation12 + $0x2e4] ss:$16 sps:$4 sm:$0xff]  }
 0x336   : > { %v1454_v44 = vpop.f32.mrf.mxu0 }
 0x337   : > { %v1466_v45 = vmax.f32 %v1465_v39, 0.0  ;;  %v4445_v39 = vld [vmem:[#allocation12 + $0x2e0] ss:$16 sps:$4 sm:$0xff]   ;;  %v4450_v44 = vld [vmem:[#allocation12 + $0xe4] ss:$16 sps:$4 sm:$0xff]  }
 0x338   : > { %v4252_v18 = vpop.f32.mrf.mxu0  ;;  %2889 = vmatprep.subr.bf16.mxu0 %v4450_v44  ;;  %v4543_v44 = vld [vmem:[#allocation12 + $0x2ec] ss:$16 sps:$4 sm:$0xff]  }
 0x339   : > { %v1468_v46 = vcombine.high %v1466_v45, %v1466_v45  ;;  %v1475_v47 = vrot.slane %v1466_v45, %v5205_v21  ;;  %v4448_v45 = vld [vmem:[#allocation12 + $0xe0] ss:$16 sps:$4 sm:$0xff]   ;;  %v4453_v18 = vld [vmem:[#allocation12 + $0x2c4] ss:$16 sps:$4 sm:$0xff]  }
 0x33b   : > { %v1482_v48 = vrot.slane %v1468_v46, %v5205_v21  ;;  %v1483_v49 = vcombine.high %v1475_v47, %v1475_v47  ;;  %v1490_v50 = vsel %vm1489_vm0, %v1475_v47, -inf  ;;  %v4451_v46 = vld [vmem:[#allocation12 + $0x2c0] ss:$16 sps:$4 sm:$0xff]   ;;  %v4456_v47 = vld [vmem:[#allocation12 + $0xc4] ss:$16 sps:$4 sm:$0xff]  }
 0x33c   : > { %v1491_v51 = vrot.slane %v1490_v50, 4 }
 0x33d   : > { %v1484_v52 = vcombine.high %v1482_v48, %v1482_v48  ;;  %v1497_v53 = vsel %vm1489_vm0, %v1483_v49, -inf  ;;  %v1504_v54 = vsel %vm1489_vm0, %v1482_v48, -inf  ;;  %v4454_v48 = vld [vmem:[#allocation12 + $0xc0] ss:$16 sps:$4 sm:$0xff]   ;;  %v4459_v49 = vld [vmem:[#allocation12 + $0x2a4] ss:$16 sps:$4 sm:$0xff]  }
 0x33e   : > { %v1492_v55 = vmax.f32 %v1490_v50, %v1491_v51  ;;  %v1498_v56 = vrot.slane %v1497_v53, 4  ;;  %v1505_v57 = vrot.slane %v1504_v54, 4  ;;  %v4457_v50 = vld [vmem:[#allocation12 + $0x2a0] ss:$16 sps:$4 sm:$0xff]   ;;  %v4462_v51 = vld [vmem:[#allocation12 + $0xa4] ss:$16 sps:$4 sm:$0xff]  }
 0x33f   : > { %v1511_v58 = vsel %vm1489_vm0, %v1484_v52, -inf  ;;  %v4460_v52 = vld [vmem:[#allocation12 + $0xa0] ss:$16 sps:$4 sm:$0xff]  }
 0x340   : > { %v1493_v59 = vrot.slane %v1492_v55, 2  ;;  %v1499_v60 = vmax.f32 %v1497_v53, %v1498_v56  ;;  %v1506_v61 = vmax.f32 %v1504_v54, %v1505_v57  ;;  %v1512_v62 = vrot.slane %v1511_v58, 4  ;;  %v4465_v53 = vld [vmem:[#allocation12 + $0x284] ss:$16 sps:$4 sm:$0xff]   ;;  %v4463_v54 = vld [vmem:[#allocation12 + $0x280] ss:$16 sps:$4 sm:$0xff]  }
 0x341   : > { %v4466_v56 = vld [vmem:[#allocation12 + $0x80] ss:$16 sps:$4 sm:$0xff]   ;;  %v4471_v57 = vld [vmem:[#allocation12 + $0x264] ss:$16 sps:$4 sm:$0xff]  }
 0x342   : > { %v1494_v63 = vmax.f32 %v1492_v55, %v1493_v59  ;;  %v1500_v0 = vrot.slane %v1499_v60, 2  ;;  %v1507_v10 = vrot.slane %v1506_v61, 2  ;;  %v1513_v1 = vmax.f32 %v1511_v58, %v1512_v62  ;;  %v4468_v55 = vld [vmem:[#allocation12 + $0x84] ss:$16 sps:$4 sm:$0xff]   ;;  %v4469_v58 = vld [vmem:[#allocation12 + $0x260] ss:$16 sps:$4 sm:$0xff]  }
 0x343   : > { %v4474_v59 = vld [vmem:[#allocation12 + $0x64] ss:$16 sps:$4 sm:$0xff]   ;;  %v4475_v62 = vld [vmem:[#allocation12 + $0x240] ss:$16 sps:$4 sm:$0xff]  }
 0x344   : > { %v1495_v2 = vrot.slane %v1494_v63, 1  ;;  %v1501_v3 = vmax.f32 %v1499_v60, %v1500_v0  ;;  %v1508_v4 = vmax.f32 %v1506_v61, %v1507_v10  ;;  %v1514_v5 = vrot.slane %v1513_v1, 2  ;;  %v4472_v60 = vld [vmem:[#allocation12 + $0x60] ss:$16 sps:$4 sm:$0xff]   ;;  %v4477_v61 = vld [vmem:[#allocation12 + $0x244] ss:$16 sps:$4 sm:$0xff]  }
 0x345   : > { %v4478_v0 = vld [vmem:[#allocation12 + $0x40] ss:$16 sps:$4 sm:$0xff]   ;;  %v4483_v10 = vld [vmem:[#allocation12 + $0x224] ss:$16 sps:$4 sm:$0xff]  }
 0x346   : > { %v1502_v6 = vrot.slane %v1501_v3, 1  ;;  %v1509_v7 = vrot.slane %v1508_v4, 1  ;;  %v1515_v8 = vmax.f32 %v1513_v1, %v1514_v5  ;;  %v1496_v9 = vmax.f32 %v1494_v63, %v1495_v2  ;;  %v4480_v63 = vld [vmem:[#allocation12 + $0x44] ss:$16 sps:$4 sm:$0xff]   ;;  %v4481_v1 = vld [vmem:[#allocation12 + $0x220] ss:$16 sps:$4 sm:$0xff]  }
 0x347   : > { %v4486_v2 = vld [vmem:[#allocation12 + $0x24] ss:$16 sps:$4 sm:$0xff]   ;;  %v4487_v5 = vld [vmem:[#allocation12 + $0x200] ss:$16 sps:$4 sm:$0xff]  }
 0x348   : > { %v1503_v11 = vmax.f32 %v1501_v3, %v1502_v6  ;;  %v1510_v12 = vmax.f32 %v1508_v4, %v1509_v7  ;;  %v1516_v13 = vrot.slane %v1515_v8, 1  ;;  %v4484_v3 = vld [vmem:[#allocation12 + $0x20] ss:$16 sps:$4 sm:$0xff]   ;;  %v4489_v4 = vld [vmem:[#allocation12 + $0x204] ss:$16 sps:$4 sm:$0xff]  }
 0x349   : > { %v4492_v6 = vld [vmem:[#allocation12 + $0x4] ss:$16 sps:$4 sm:$0xff]   ;;  %v4490_v7 = vld [vmem:[#allocation12] ss:$16 sps:$4 sm:$0xff]  }
 0x34a   : > { %v1517_v14 = vmax.f32 %v1515_v8, %v1516_v13  ;;  %v1522_v15 = vsel %vm875_vm5, %v1503_v11, %v1496_v9  ;;  %v4495_v8 = vld [vmem:[#allocation12 + $0x3e4] ss:$16 sps:$4 sm:$0xff]   ;;  %v4493_v9 = vld [vmem:[#allocation12 + $0x3e0] ss:$16 sps:$4 sm:$0xff]  }
 0x34b   : > { %v1523_v16 = vsel %vm877_vm6, %v1510_v12, %v1522_v15  ;;  %v4498_v11 = vld [vmem:[#allocation12 + $0x1e4] ss:$16 sps:$4 sm:$0xff]   ;;  %v4496_v12 = vld [vmem:[#allocation12 + $0x1e0] ss:$16 sps:$4 sm:$0xff]  }
 0x34c   : > { %v1524_v19 = vsel %vm879_vm7, %v1517_v14, %v1523_v16  ;;  %v4501_v13 = vld [vmem:[#allocation12 + $0x3c4] ss:$16 sps:$4 sm:$0xff]   ;;  %v4499_v14 = vld [vmem:[#allocation12 + $0x3c0] ss:$16 sps:$4 sm:$0xff]  }
 0x34d   : > { %1526 = vst [vmem:[#allocation4 + $0x1] sm:$0xf] %v1524_v19  ;;  %v4504_v15 = vld [vmem:[#allocation12 + $0x1c4] ss:$16 sps:$4 sm:$0xff]   ;;  %v4502_v16 = vld [vmem:[#allocation12 + $0x1c0] ss:$16 sps:$4 sm:$0xff]  }
 0x34e   : > { %v4507_v19 = vld [vmem:[#allocation12 + $0x3a4] ss:$16 sps:$4 sm:$0xff]  }
 0x354   : > { %v1545_v22 = vld [vmem:[#allocation4 + $0x1] sm:$0xf] }
 0x355   : > { %v1527_v23 = vld [vmem:[#allocation4] sm:$0xf]  ;;  %v1546_v24 = vpack.c.bf16 %v1545_v22, %v1545_v22  ;;  %v4508_v22 = vld [vmem:[#allocation12 + $0x1a0] ss:$16 sps:$4 sm:$0xff]  }
 0x356   : > { %v1528_v25 = vpack.c.bf16 %v1527_v23, %v1527_v23  ;;  %v1806_v36 = vld [vmem:[#allocation4 + $0x2] sm:$0xf] }
 0x357   : > { %1677 = vmatmul.mubr.bf16.vlgmr.msra.gmra.mxu1 %v1546_v24  ;;  %v1807_v42 = vpack.c.bf16 %v1806_v36, %v1806_v36  ;;  %v4510_v23 = vld [vmem:[#allocation12 + $0x1a4] ss:$16 sps:$4 sm:$0xff]   ;;  %v4532_v36 = vld [vmem:[#allocation12 + $0x120] ss:$16 sps:$4 sm:$0xff]  }
 0x358   : > { %1798 = vmatmul.mubr.bf16.vlgmr.msra.gmra.mxu0 %v1528_v25  ;;  %1906 = vmatpush1.bf16.msra.mxu1 %v4421_v20  ;;  %v4505_v20 = vld [vmem:[#allocation12 + $0x3a0] ss:$16 sps:$4 sm:$0xff]   ;;  %v4513_v24 = vld [vmem:[#allocation12 + $0x384] ss:$16 sps:$4 sm:$0xff]  }
 0x359   : > { %1937 = vmatprep.mubr.bf16.mxu1 %v4967_v29  ;;  %1907 = vmatprep.subr.bf16.mxu1 %v4426_v26  ;;  %v4439_v29 = vld [vmem:[#allocation11 + $0x110] ss:$8 sps:$4 sm:$0xff]   ;;  %v4516_v26 = vld [vmem:[#allocation12 + $0x184] ss:$16 sps:$4 sm:$0xff]  }
 0x35a   : > { %2890 = vmatpush1.bf16.msra.mxu0 %v4448_v45  ;;  %v4511_v25 = vld [vmem:[#allocation12 + $0x380] ss:$16 sps:$4 sm:$0xff]   ;;  %v4546_v45 = vld [vmem:[#allocation12 + $0xec] ss:$16 sps:$4 sm:$0xff]  }
 0x35b   : > { %2891 = vmatprep.subr.bf16.mxu0 %v4456_v47 }
 0x35c   : > { %1908 = vmatpush1.bf16.msra.mxu1 %v4424_v27  ;;  %v4519_v27 = vld [vmem:[#allocation12 + $0x364] ss:$16 sps:$4 sm:$0xff]  }
 0x35d   : > { %1909 = vmatprep.subr.bf16.mxu1 %v4429_v28  ;;  %v4514_v28 = vld [vmem:[#allocation12 + $0x180] ss:$16 sps:$4 sm:$0xff]  }
 0x35e   : > { %2892 = vmatpush1.bf16.msra.mxu0 %v4454_v48 }
 0x35f   : > { %2893 = vmatprep.subr.bf16.mxu0 %v4462_v51 }
 0x360   : > { %1910 = vmatpush1.bf16.msra.mxu1 %v4427_v30  ;;  %v4522_v30 = vld [vmem:[#allocation12 + $0x164] ss:$16 sps:$4 sm:$0xff]  }
 0x361   : > { %1911 = vmatprep.subr.bf16.mxu1 %v4432_v31  ;;  %v4517_v31 = vld [vmem:[#allocation12 + $0x360] ss:$16 sps:$4 sm:$0xff]  }
 0x362   : > { %2894 = vmatpush1.bf16.msra.mxu0 %v4460_v52 }
 0x363   : > { %2895 = vmatprep.subr.bf16.mxu0 %v4468_v55  ;;  %v5323_v55 = vsub.s32 1, %v5196_v17 }
 0x364   : > { %1912 = vmatpush1.bf16.msra.mxu1 %v4430_v32  ;;  %v4525_v32 = vld [vmem:[#allocation12 + $0x344] ss:$16 sps:$4 sm:$0xff]  }
 0x365   : > { %1913 = vmatprep.subr.bf16.mxu1 %v4435_v33  ;;  %v4520_v33 = vld [vmem:[#allocation12 + $0x160] ss:$16 sps:$4 sm:$0xff]  }
 0x366   : > { %2896 = vmatpush1.bf16.msra.mxu0 %v4466_v56 }
 0x367   : > { %2897 = vmatprep.subr.bf16.mxu0 %v4474_v59 }
 0x368   : > { %1914 = vmatpush1.bf16.msra.mxu1 %v4433_v34  ;;  %v4528_v34 = vld [vmem:[#allocation12 + $0x144] ss:$16 sps:$4 sm:$0xff]  }
 0x369   : > { %1915 = vmatprep.subr.bf16.mxu1 %v4438_v35  ;;  %v4523_v35 = vld [vmem:[#allocation12 + $0x340] ss:$16 sps:$4 sm:$0xff]  }
 0x36a   : > { %2898 = vmatpush1.bf16.msra.mxu0 %v4472_v60 }
 0x36b   : > { %2899 = vmatprep.subr.bf16.mxu0 %v4480_v63 }
 0x36c   : > { %1916 = vmatpush1.bf16.msra.mxu1 %v4436_v37  ;;  %v4531_v37 = vld [vmem:[#allocation12 + $0x324] ss:$16 sps:$4 sm:$0xff]  }
 0x36d   : > { %1917 = vmatprep.subr.bf16.mxu1 %v4441_v38  ;;  %v4526_v38 = vld [vmem:[#allocation12 + $0x140] ss:$16 sps:$4 sm:$0xff]  }
 0x36e   : > { %2900 = vmatpush1.bf16.msra.mxu0 %v4478_v0 }
 0x36f   : > { %2901 = vmatprep.subr.bf16.mxu0 %v4486_v2 }
 0x370   : > { %1918 = vmatpush1.bf16.msra.mxu1 %v4439_v29  ;;  %v4534_v29 = vld [vmem:[#allocation12 + $0x124] ss:$16 sps:$4 sm:$0xff]  }
 0x371   : > { %1919 = vmatprep.subr.bf16.mxu1 %v4444_v40  ;;  %v4529_v40 = vld [vmem:[#allocation12 + $0x320] ss:$16 sps:$4 sm:$0xff]  }
 0x372   : > { %2902 = vmatpush1.bf16.msra.mxu0 %v4484_v3 }
 0x373   : > { %2903 = vmatprep.subr.bf16.mxu0 %v4492_v6 }
 0x374   : > { %1920 = vmatpush1.bf16.msra.mxu1 %v4442_v41  ;;  %v4537_v41 = vld [vmem:[#allocation12 + $0x304] ss:$16 sps:$4 sm:$0xff]  }
 0x375   : > { %2930 = vmatprep.subr.bf16.mxu1 %v4447_v43  ;;  %v4535_v43 = vld [vmem:[#allocation12 + $0x300] ss:$16 sps:$4 sm:$0xff]  }
 0x376   : > { %2904 = vmatpush1.bf16.msra.mxu0 %v4490_v7 }
 0x377   : > { %1938 = vmatmul.mubr.bf16.vlgmr.msra.gmra.mxu1 %v1807_v42  ;;  %2905 = vmatprep.subr.bf16.mxu0 %v4498_v11  ;;  %v4540_v42 = vld [vmem:[#allocation12 + $0x104] ss:$16 sps:$4 sm:$0xff]  }
 0x378   : > { %2931 = vmatpush1.bf16.msra.mxu1 %v4445_v39  ;;  %v4538_v39 = vld [vmem:[#allocation12 + $0x100] ss:$16 sps:$4 sm:$0xff]  }
 0x379   : > { %2932 = vmatprep.subr.bf16.mxu1 %v4453_v18 }
 0x37a   : > { %2906 = vmatpush2.bf16.msra.mxu0 %v4496_v12 }
 0x37b   : > { %2907 = vmatprep.subr.bf16.mxu0 %v4504_v15 }
 0x37c   : > { %2933 = vmatpush1.bf16.msra.mxu1 %v4451_v46 }
 0x37d   : > { %2934 = vmatprep.subr.bf16.mxu1 %v4459_v49 }
 0x37e   : > { %2908 = vmatpush2.bf16.msra.mxu0 %v4502_v16 }
 0x37f   : > { %2909 = vmatprep.subr.bf16.mxu0 %v4510_v23 }
 0x380   : > { %2935 = vmatpush1.bf16.msra.mxu1 %v4457_v50 }
 0x381   : > { %2936 = vmatprep.subr.bf16.mxu1 %v4465_v53  ;;  %v5317_v53 = vsub.s32 0, %v5196_v17 }
 0x382   : > { %2910 = vmatpush2.bf16.msra.mxu0 %v4508_v22 }
 0x383   : > { %2911 = vmatprep.subr.bf16.mxu0 %v4516_v26 }
 0x384   : > { %2937 = vmatpush1.bf16.msra.mxu1 %v4463_v54  ;;  %v1948_v54 = vld [vmem:[%s5607_s8] sm:$0x3] }
 0x385   : > { %2938 = vmatprep.subr.bf16.mxu1 %v4471_v57  ;;  %v1953_v57 = vrot.slane %v1948_v54, %v5317_v53 }
 0x386   : > { %2912 = vmatpush2.bf16.msra.mxu0 %v4514_v28 }
 0x387   : > { %2913 = vmatprep.subr.bf16.mxu0 %v4522_v30 }
 0x388   : > { %2939 = vmatpush1.bf16.msra.mxu1 %v4469_v58 }
 0x389   : > { %2940 = vmatprep.subr.bf16.mxu1 %v4477_v61  ;;  %v1957_v61 = vrot.slane %v1948_v54, %v5323_v55 }
 0x38a   : > { %2914 = vmatpush2.bf16.msra.mxu0 %v4520_v33 }
 0x38b   : > { %2915 = vmatprep.subr.bf16.mxu0 %v4528_v34 }
 0x38c   : > { %2941 = vmatpush1.bf16.msra.mxu1 %v4475_v62 }
 0x38d   : > { %2942 = vmatprep.subr.bf16.mxu1 %v4483_v10 }
 0x38e   : > { %2916 = vmatpush2.bf16.msra.mxu0 %v4526_v38 }
 0x38f   : > { %2917 = vmatprep.subr.bf16.mxu0 %v4534_v29 }
 0x390   : > { %2943 = vmatpush1.bf16.msra.mxu1 %v4481_v1 }
 0x391   : > { %2944 = vmatprep.subr.bf16.mxu1 %v4489_v4 }
 0x392   : > { %2918 = vmatpush2.bf16.msra.mxu0 %v4532_v36 }
 0x393   : > { %2919 = vmatprep.subr.bf16.mxu0 %v4540_v42 }
 0x394   : > { %2945 = vmatpush1.bf16.msra.mxu1 %v4487_v5 }
 0x395   : > { %2946 = vmatprep.subr.bf16.mxu1 %v4495_v8 }
 0x396   : > { %2920 = vmatpush2.bf16.msra.mxu0 %v4538_v39 }
 0x397   : > { %2971 = vmatprep.subr.bf16.mxu0 %v4546_v45 }
 0x398   : > { %2947 = vmatpush2.bf16.msra.mxu1 %v4493_v9 }
 0x399   : > { %2948 = vmatprep.subr.bf16.mxu1 %v4501_v13 }
 0x39c   : > { %2949 = vmatpush2.bf16.msra.mxu1 %v4499_v14 }
 0x39d   : > { %2950 = vmatprep.subr.bf16.mxu1 %v4507_v19 }
 0x3a0   : > { %2951 = vmatpush2.bf16.msra.mxu1 %v4505_v20 }
 0x3a1   : > { %2952 = vmatprep.subr.bf16.mxu1 %v4513_v24 }
 0x3a4   : > { %2953 = vmatpush2.bf16.msra.mxu1 %v4511_v25 }
 0x3a5   : > { %2954 = vmatprep.subr.bf16.mxu1 %v4519_v27 }
 0x3a8   : > { %2955 = vmatpush2.bf16.msra.mxu1 %v4517_v31 }
 0x3a9   : > { %2956 = vmatprep.subr.bf16.mxu1 %v4525_v32 }
 0x3ac   : > { %2957 = vmatpush2.bf16.msra.mxu1 %v4523_v35 }
 0x3ad   : > { %2958 = vmatprep.subr.bf16.mxu1 %v4531_v37 }
 0x3b0   : > { %2959 = vmatpush2.bf16.msra.mxu1 %v4529_v40 }
 0x3b1   : > { %2960 = vmatprep.subr.bf16.mxu1 %v4537_v41 }
 0x3b4   : > { %2961 = vmatpush2.bf16.msra.mxu1 %v4535_v43 }
 0x3b5   : > { %3012 = vmatprep.subr.bf16.mxu1 %v4543_v44 }
 0x417   : > { %v1678_v18 = vpop.f32.mrf.mxu1 }
 0x418   : > { %v1799_v46 = vpop.f32.mrf.mxu0 }
 0x419   : > { %v1680_v47 = vpop.f32.mrf.mxu1  ;;  %v1800_v56 = vadd.f32 %v1799_v46, %v1678_v18 }
 0x41a   : > { %v1801_v48 = vpop.f32.mrf.mxu0 }
 0x41b   : > { %v1682_v49 = vpop.f32.mrf.mxu1  ;;  %v1802_v59 = vadd.f32 %v1801_v48, %v1680_v47 }
 0x41c   : > { %v1803_v50 = vpop.f32.mrf.mxu0 }
 0x41d   : > { %v1683_v51 = vpop.f32.mrf.mxu1 }
 0x41e   : > { %v1804_v52 = vpop.f32.mrf.mxu0 }
 0x437   : > { %v1939_v58 = vpop.f32.mrf.mxu1 }
 0x438   : > { %v1946_v60 = vadd.f32 %v1939_v58, %v1800_v56 }
 0x439   : > { %v1941_v62 = vpop.f32.mrf.mxu1 }
 0x43a   : > { %v1960_v63 = vadd.f32 %v1953_v57, %v1946_v60  ;;  %v1947_v0 = vadd.f32 %v1941_v62, %v1802_v59 }
 0x43b   : > { %v1943_v10 = vpop.f32.mrf.mxu1 }
 0x43c   : > { %v1961_v1 = vadd.f32 %v1957_v61, %v1947_v0  ;;  %v1962_v3 = vmax.f32 %v1960_v63, 0.0 }
 0x43d   : > { %v1944_v2 = vpop.f32.mrf.mxu1 }
 0x43e   : > { %v1963_v4 = vmax.f32 %v1961_v1, 0.0 }
 0x440   : > { %v1966_v5 = vcombine.low %v1962_v3, %v1963_v4 }
 0x442   : > { %v1973_v6 = vrot.slane %v1966_v5, %v5205_v21 }
 0x444   : > { %v1974_v7 = vcombine.high %v1973_v6, %v1973_v6  ;;  %v1981_v8 = vrot.slane %v1973_v6, %v5205_v21 }
 0x446   : > { %v1982_v9 = vcombine.high %v1981_v8, %v1981_v8  ;;  %v1989_v11 = vrot.slane %v1974_v7, %v5205_v21  ;;  %v1995_v12 = vsel %vm1489_vm0, %v1981_v8, -inf }
 0x447   : > { %v1996_v13 = vrot.slane %v1995_v12, 4 }
 0x448   : > { %v1990_v14 = vcombine.high %v1989_v11, %v1989_v11  ;;  %v2002_v15 = vsel %vm1489_vm0, %v1982_v9, -inf  ;;  %v2009_v16 = vsel %vm1489_vm0, %v1989_v11, -inf }
 0x449   : > { %v1997_v19 = vmax.f32 %v1995_v12, %v1996_v13  ;;  %v2003_v20 = vrot.slane %v2002_v15, 4  ;;  %v2010_v22 = vrot.slane %v2009_v16, 4 }
 0x44a   : > { %v2016_v23 = vsel %vm1489_vm0, %v1990_v14, -inf }
 0x44b   : > { %v1998_v24 = vrot.slane %v1997_v19, 2  ;;  %v2004_v25 = vmax.f32 %v2002_v15, %v2003_v20  ;;  %v2011_v26 = vmax.f32 %v2009_v16, %v2010_v22  ;;  %v2017_v27 = vrot.slane %v2016_v23, 4 }
 0x44d   : > { %v1999_v28 = vmax.f32 %v1997_v19, %v1998_v24  ;;  %v2005_v30 = vrot.slane %v2004_v25, 2  ;;  %v2012_v31 = vrot.slane %v2011_v26, 2  ;;  %v2018_v32 = vmax.f32 %v2016_v23, %v2017_v27  ;;  %v4541_v24 = vld [vmem:[#allocation12 + $0x2e8] ss:$16 sps:$4 sm:$0xff]  }
 0x44f   : > { %v2006_v33 = vmax.f32 %v2004_v25, %v2005_v30  ;;  %v2013_v34 = vmax.f32 %v2011_v26, %v2012_v31  ;;  %v2019_v35 = vrot.slane %v2018_v32, 2  ;;  %v2000_v37 = vrot.slane %v1999_v28, 1  ;;  %v4549_v31 = vld [vmem:[#allocation12 + $0x2cc] ss:$16 sps:$4 sm:$0xff]  }
 0x451   : > { %v2007_v38 = vrot.slane %v2006_v33, 1  ;;  %v2014_v29 = vrot.slane %v2013_v34, 1  ;;  %v2020_v40 = vmax.f32 %v2018_v32, %v2019_v35  ;;  %v2001_v42 = vmax.f32 %v1999_v28, %v2000_v37  ;;  %v4544_v28 = vld [vmem:[#allocation12 + $0xe8] ss:$16 sps:$4 sm:$0xff]   ;;  %v4552_v32 = vld [vmem:[#allocation12 + $0xcc] ss:$16 sps:$4 sm:$0xff]  }
 0x452   : > { %v4550_v35 = vld [vmem:[#allocation12 + $0xc8] ss:$16 sps:$4 sm:$0xff]   ;;  %v4558_v37 = vld [vmem:[#allocation12 + $0xac] ss:$16 sps:$4 sm:$0xff]  }
 0x453   : > { %v2008_v41 = vmax.f32 %v2006_v33, %v2007_v38  ;;  %v2021_v36 = vrot.slane %v2020_v40, 1  ;;  %v2015_v43 = vmax.f32 %v2013_v34, %v2014_v29  ;;  %v4547_v33 = vld [vmem:[#allocation12 + $0x2c8] ss:$16 sps:$4 sm:$0xff]   ;;  %v4555_v34 = vld [vmem:[#allocation12 + $0x2ac] ss:$16 sps:$4 sm:$0xff]  }
 0x454   : > { %v4553_v38 = vld [vmem:[#allocation12 + $0x2a8] ss:$16 sps:$4 sm:$0xff]   ;;  %v4561_v29 = vld [vmem:[#allocation12 + $0x28c] ss:$16 sps:$4 sm:$0xff]  }
 0x455   : > { %v2022_v39 = vmax.f32 %v2020_v40, %v2021_v36  ;;  %v2027_v44 = vcombine.low %v2001_v42, %v2008_v41  ;;  %v4556_v40 = vld [vmem:[#allocation12 + $0xa8] ss:$16 sps:$4 sm:$0xff]   ;;  %v4564_v41 = vld [vmem:[#allocation12 + $0x8c] ss:$16 sps:$4 sm:$0xff]  }
 0x456   : > { %v4559_v36 = vld [vmem:[#allocation12 + $0x288] ss:$16 sps:$4 sm:$0xff]   ;;  %v4567_v42 = vld [vmem:[#allocation12 + $0x26c] ss:$16 sps:$4 sm:$0xff]  }
 0x457   : > { %v2035_v45 = vcombine.low %v2015_v43, %v2022_v39  ;;  %v2034_v46 = vrot.slane %v2027_v44, %v5205_v21  ;;  %v4562_v43 = vld [vmem:[#allocation12 + $0x88] ss:$16 sps:$4 sm:$0xff]   ;;  %v4570_v39 = vld [vmem:[#allocation12 + $0x6c] ss:$16 sps:$4 sm:$0xff]  }
 0x458   : > { %v4565_v44 = vld [vmem:[#allocation12 + $0x268] ss:$16 sps:$4 sm:$0xff]  }
 0x459   : > { %v2042_v18 = vrot.slane %v2035_v45, %v5205_v21  ;;  %v4573_v45 = vld [vmem:[#allocation12 + $0x24c] ss:$16 sps:$4 sm:$0xff]  }
 0x45b   : > { %v2045_v47 = vrot.slane %v2042_v18, 7  ;;  %v4568_v18 = vld [vmem:[#allocation12 + $0x68] ss:$16 sps:$4 sm:$0xff]  }
 0x45d   : > { %v2046_v48 = vsel %vm875_vm5, %v2045_v47, %v2034_v46  ;;  %v4576_v46 = vld [vmem:[#allocation12 + $0x4c] ss:$16 sps:$4 sm:$0xff]  }
 0x45e   : > { %v2047_v49 = vsel %vm879_vm7, %v2045_v47, %v2046_v48  ;;  %v4579_v48 = vld [vmem:[#allocation12 + $0x22c] ss:$16 sps:$4 sm:$0xff]  }
 0x45f   : > { %v2048_v50 = vsel %vm883_vm9, %v2045_v47, %v2047_v49  ;;  %v4574_v49 = vld [vmem:[#allocation12 + $0x48] ss:$16 sps:$4 sm:$0xff]  }
 0x460   : > { %v2049_v51 = vsel %vm887_vm11, %v2045_v47, %v2048_v50  ;;  %v4571_v47 = vld [vmem:[#allocation12 + $0x248] ss:$16 sps:$4 sm:$0xff]   ;;  %v4582_v50 = vld [vmem:[#allocation12 + $0x2c] ss:$16 sps:$4 sm:$0xff]  }
 0x461   : > { %2051 = vst [vmem:[#allocation5] sm:$0xf] %v2049_v51  ;;  %v4577_v51 = vld [vmem:[#allocation12 + $0x228] ss:$16 sps:$4 sm:$0xff]  }
 0x468   : > { %v3925_v52 = vld.sshfl [vmem:[#allocation5] sm:$0x33 pattern:$0x76325410] }
 0x469   : > { %v2061_v54 = vcombine.high %v3925_v52, %v3925_v52  ;;  %v2081_v56 = vsel %vm1489_vm0, %v3925_v52, -inf  ;;  %v2064_v57 = vsel %vm1489_vm0, %v3925_v52, 0.0  ;;  %v4585_v52 = vld [vmem:[#allocation12 + $0x20c] ss:$16 sps:$4 sm:$0xff]  }
 0x46a   : > { %v2082_v58 = vrot.slane %v2081_v56, 4  ;;  %v2065_v59 = vrot.slane %v2064_v57, 4 }
 0x46b   : > { %v2088_v21 = vsel %vm1489_vm0, %v2061_v54, -inf  ;;  %v2071_v60 = vsel %vm1489_vm0, %v2061_v54, 0.0  ;;  %v4580_v54 = vld [vmem:[#allocation12 + $0x28] ss:$16 sps:$4 sm:$0xff]  }
 0x46c   : > { %v2089_v61 = vrot.slane %v2088_v21, 4  ;;  %v2083_v62 = vmax.f32 %v2081_v56, %v2082_v58  ;;  %v2072_v63 = vrot.slane %v2071_v60, 4  ;;  %v2066_v0 = vadd.f32 %v2065_v59, %v2064_v57  ;;  %v4588_v56 = vld [vmem:[#allocation12 + $0xc] ss:$16 sps:$4 sm:$0xff]   ;;  %v4583_v57 = vld [vmem:[#allocation12 + $0x208] ss:$16 sps:$4 sm:$0xff]  }
 0x46d   : > { %v4591_v58 = vld [vmem:[#allocation12 + $0x3ec] ss:$16 sps:$4 sm:$0xff]   ;;  %v4586_v59 = vld [vmem:[#allocation12 + $0x8] ss:$16 sps:$4 sm:$0xff]  }
 0x46e   : > { %v2090_v10 = vmax.f32 %v2088_v21, %v2089_v61  ;;  %v2084_v1 = vrot.slane %v2083_v62, 2  ;;  %v2073_v2 = vadd.f32 %v2072_v63, %v2071_v60  ;;  %v2067_v3 = vrot.slane %v2066_v0, 2  ;;  %v4594_v21 = vld [vmem:[#allocation12 + $0x1ec] ss:$16 sps:$4 sm:$0xff]   ;;  %v4589_v60 = vld [vmem:[#allocation12 + $0x3e8] ss:$16 sps:$4 sm:$0xff]  }
 0x46f   : > { %v4597_v61 = vld [vmem:[#allocation12 + $0x3cc] ss:$16 sps:$4 sm:$0xff]  }
 0x470   : > { %v2091_v4 = vrot.slane %v2090_v10, 2  ;;  %v2085_v5 = vmax.f32 %v2083_v62, %v2084_v1  ;;  %v2074_v6 = vrot.slane %v2073_v2, 2  ;;  %v2068_v7 = vadd.f32 %v2067_v3, %v2066_v0  ;;  %v4592_v62 = vld [vmem:[#allocation12 + $0x1e8] ss:$16 sps:$4 sm:$0xff]   ;;  %v4600_v63 = vld [vmem:[#allocation12 + $0x1cc] ss:$16 sps:$4 sm:$0xff]  }
 0x471   : > { %v4595_v0 = vld [vmem:[#allocation12 + $0x3c8] ss:$16 sps:$4 sm:$0xff]  }
 0x472   : > { %v2092_v8 = vmax.f32 %v2090_v10, %v2091_v4  ;;  %v2086_v9 = vrot.slane %v2085_v5, 1  ;;  %v2075_v11 = vadd.f32 %v2074_v6, %v2073_v2  ;;  %v2069_v12 = vrot.slane %v2068_v7, 1  ;;  %v4603_v10 = vld [vmem:[#allocation12 + $0x3ac] ss:$16 sps:$4 sm:$0xff]   ;;  %v4598_v1 = vld [vmem:[#allocation12 + $0x1c8] ss:$16 sps:$4 sm:$0xff]  }
 0x473   : > { %v4606_v2 = vld [vmem:[#allocation12 + $0x1ac] ss:$16 sps:$4 sm:$0xff]   ;;  %v4601_v3 = vld [vmem:[#allocation12 + $0x3a8] ss:$16 sps:$4 sm:$0xff]  }
 0x474   : > { %v2093_v13 = vrot.slane %v2092_v8, 1  ;;  %v2076_v14 = vrot.slane %v2075_v11, 1  ;;  %v2070_v15 = vadd.f32 %v2069_v12, %v2068_v7  ;;  %v2087_v16 = vmax.f32 %v2085_v5, %v2086_v9  ;;  %v4609_v4 = vld [vmem:[#allocation12 + $0x38c] ss:$16 sps:$4 sm:$0xff]   ;;  %v4604_v5 = vld [vmem:[#allocation12 + $0x1a8] ss:$16 sps:$4 sm:$0xff]  }
 0x475   : > { %v4612_v6 = vld [vmem:[#allocation12 + $0x18c] ss:$16 sps:$4 sm:$0xff]   ;;  %v4607_v7 = vld [vmem:[#allocation12 + $0x388] ss:$16 sps:$4 sm:$0xff]  }
 0x476   : > { %v2094_v19 = vmax.f32 %v2092_v8, %v2093_v13  ;;  %v2077_v20 = vadd.f32 %v2076_v14, %v2075_v11  ;;  %v2079_v22 = vmul.f32 0.5, %v2070_v15  ;;  %v5344_v26 = vpack.c.bf16 %v2087_v16, %v2087_v16  ;;  %v4615_v8 = vld [vmem:[#allocation12 + $0x36c] ss:$16 sps:$4 sm:$0xff]   ;;  %v4610_v9 = vld [vmem:[#allocation12 + $0x188] ss:$16 sps:$4 sm:$0xff]  }
 0x477   : > { %v4618_v11 = vld [vmem:[#allocation12 + $0x16c] ss:$16 sps:$4 sm:$0xff]   ;;  %v4613_v12 = vld [vmem:[#allocation12 + $0x368] ss:$16 sps:$4 sm:$0xff]  }
 0x478   : > { %v2098_v23 = vpack.c.bf16 %v2094_v19, %v2094_v19  ;;  %v2080_v25 = vmul.f32 0.5, %v2077_v20  ;;  %v5347_v30 = vpack.c.bf16 %v2079_v22, %v2079_v22  ;;  %v4621_v13 = vld [vmem:[#allocation12 + $0x34c] ss:$16 sps:$4 sm:$0xff]   ;;  %v4616_v14 = vld [vmem:[#allocation12 + $0x168] ss:$16 sps:$4 sm:$0xff]  }
 0x479   : > { %v4624_v15 = vld [vmem:[#allocation12 + $0x14c] ss:$16 sps:$4 sm:$0xff]   ;;  %v4619_v16 = vld [vmem:[#allocation12 + $0x348] ss:$16 sps:$4 sm:$0xff]  }
 0x47a   : > { %2962 = vmatprep.mubr.bf16.mxu1 %v2098_v23  ;;  %v2096_v27 = vpack.c.bf16 %v2080_v25, %v2080_v25  ;;  %v4627_v19 = vld [vmem:[#allocation12 + $0x32c] ss:$16 sps:$4 sm:$0xff]   ;;  %v4622_v20 = vld [vmem:[#allocation12 + $0x148] ss:$16 sps:$4 sm:$0xff]  }
 0x47b   : > { %2963 = vmatmul.mubr.bf16.vlgmr.msra.gmra.mxu1 %v5344_v26  ;;  %v4630_v22 = vld [vmem:[#allocation12 + $0x12c] ss:$16 sps:$4 sm:$0xff]   ;;  %v4628_v25 = vld [vmem:[#allocation12 + $0x128] ss:$16 sps:$4 sm:$0xff]  }
 0x47c   : > { %3013 = vmatpush1.bf16.msra.mxu1 %v4541_v24  ;;  %2921 = vmatprep.mubr.bf16.mxu0 %v2096_v27  ;;  %v4633_v24 = vld [vmem:[#allocation12 + $0x30c] ss:$16 sps:$4 sm:$0xff]  }
 0x47d   : > { %3044 = vmatprep.mubr.bf16.mxu1 %v2098_v23  ;;  %2922 = vmatmul.mubr.bf16.vlgmr.msra.gmra.mxu0 %v5347_v30  ;;  %v4625_v23 = vld [vmem:[#allocation12 + $0x328] ss:$16 sps:$4 sm:$0xff]  }
 0x47e   : > { %2972 = vmatpush1.bf16.msra.mxu0 %v4544_v28  ;;  %3003 = vmatprep.mubr.bf16.mxu0 %v2096_v27  ;;  %v4636_v27 = vld [vmem:[#allocation12 + $0x10c] ss:$16 sps:$4 sm:$0xff]   ;;  %v4631_v28 = vld [vmem:[#allocation12 + $0x308] ss:$16 sps:$4 sm:$0xff]  }
 0x47f   : > { %3014 = vmatprep.subr.bf16.mxu1 %v4549_v31  ;;  %2973 = vmatprep.subr.bf16.mxu0 %v4552_v32  ;;  %v4634_v31 = vld [vmem:[#allocation12 + $0x108] ss:$16 sps:$4 sm:$0xff]  }
 0x480   : > { %3015 = vmatpush1.bf16.msra.mxu1 %v4547_v33  ;;  %v4639_v32 = vld [vmem:[%s5610_s11 + $0x74] ss:$8 sps:$4 sm:$0xff]   ;;  %v4637_v33 = vld [vmem:[%s5610_s11 + $0x70] ss:$8 sps:$4 sm:$0xff]  }
 0x481   : > { %3016 = vmatprep.subr.bf16.mxu1 %v4555_v34  ;;  %v4642_v34 = vld [vmem:[%s5610_s11 + $0x64] ss:$8 sps:$4 sm:$0xff]  }
 0x482   : > { %2974 = vmatpush1.bf16.msra.mxu0 %v4550_v35  ;;  %v4640_v35 = vld [vmem:[%s5610_s11 + $0x60] ss:$8 sps:$4 sm:$0xff]  }
 0x483   : > { %2975 = vmatprep.subr.bf16.mxu0 %v4558_v37  ;;  %v4645_v37 = vld [vmem:[%s5610_s11 + $0x54] ss:$8 sps:$4 sm:$0xff]  }
 0x484   : > { %3017 = vmatpush1.bf16.msra.mxu1 %v4553_v38  ;;  %v4646_v38 = vld [vmem:[%s5610_s11 + $0x40] ss:$8 sps:$4 sm:$0xff]  }
 0x485   : > { %3018 = vmatprep.subr.bf16.mxu1 %v4561_v29  ;;  %v4651_v29 = vld [vmem:[%s5610_s11 + $0x34] ss:$8 sps:$4 sm:$0xff]  }
 0x486   : > { %2976 = vmatpush1.bf16.msra.mxu0 %v4556_v40  ;;  %v4687_v40 = vld [vmem:[%s5610_s11 + $0x174] ss:$8 sps:$4 sm:$0xff]  }
 0x487   : > { %2977 = vmatprep.subr.bf16.mxu0 %v4564_v41  ;;  %v4685_v41 = vld [vmem:[%s5610_s11 + $0x170] ss:$8 sps:$4 sm:$0xff]  }
 0x488   : > { %3019 = vmatpush1.bf16.msra.mxu1 %v4559_v36  ;;  %v4690_v36 = vld [vmem:[%s5610_s11 + $0x164] ss:$8 sps:$4 sm:$0xff]  }
 0x489   : > { %3020 = vmatprep.subr.bf16.mxu1 %v4567_v42  ;;  %v4649_v42 = vld [vmem:[%s5610_s11 + $0x30] ss:$8 sps:$4 sm:$0xff]  }
 0x48a   : > { %2978 = vmatpush1.bf16.msra.mxu0 %v4562_v43  ;;  %v4688_v43 = vld [vmem:[%s5610_s11 + $0x160] ss:$8 sps:$4 sm:$0xff]  }
 0x48b   : > { %2979 = vmatprep.subr.bf16.mxu0 %v4570_v39  ;;  %v4654_v39 = vld [vmem:[%s5610_s11 + $0x24] ss:$8 sps:$4 sm:$0xff]  }
 0x48c   : > { %3021 = vmatpush1.bf16.msra.mxu1 %v4565_v44  ;;  %v4693_v44 = vld [vmem:[%s5610_s11 + $0x154] ss:$8 sps:$4 sm:$0xff]  }
 0x48d   : > { %3022 = vmatprep.subr.bf16.mxu1 %v4573_v45  ;;  %v4652_v45 = vld [vmem:[%s5610_s11 + $0x20] ss:$8 sps:$4 sm:$0xff]  }
 0x48e   : > { %2980 = vmatpush1.bf16.msra.mxu0 %v4568_v18  ;;  %v4691_v18 = vld [vmem:[%s5610_s11 + $0x150] ss:$8 sps:$4 sm:$0xff]  }
 0x48f   : > { %2981 = vmatprep.subr.bf16.mxu0 %v4576_v46  ;;  %v4657_v46 = vld [vmem:[%s5610_s11 + $0x14] ss:$8 sps:$4 sm:$0xff]  }
 0x490   : > { %3023 = vmatpush1.bf16.msra.mxu1 %v4571_v47  ;;  %v4696_v47 = vld [vmem:[%s5610_s11 + $0x144] ss:$8 sps:$4 sm:$0xff]  }
 0x491   : > { %3024 = vmatprep.subr.bf16.mxu1 %v4579_v48  ;;  %v4655_v48 = vld [vmem:[%s5610_s11 + $0x10] ss:$8 sps:$4 sm:$0xff]  }
 0x492   : > { %2982 = vmatpush1.bf16.msra.mxu0 %v4574_v49  ;;  %v4694_v49 = vld [vmem:[%s5610_s11 + $0x140] ss:$8 sps:$4 sm:$0xff]  }
 0x493   : > { %2983 = vmatprep.subr.bf16.mxu0 %v4582_v50  ;;  %v4660_v50 = vld [vmem:[%s5610_s11 + $0x4] ss:$8 sps:$4 sm:$0xff]  }
 0x494   : > { %3025 = vmatpush1.bf16.msra.mxu1 %v4577_v51  ;;  %v4699_v51 = vld [vmem:[%s5610_s11 + $0x134] ss:$8 sps:$4 sm:$0xff]  }
 0x495   : > { %3026 = vmatprep.subr.bf16.mxu1 %v4585_v52  ;;  %v4658_v52 = vld [vmem:[%s5610_s11] ss:$8 sps:$4 sm:$0xff]  }
 0x496   : > { %2984 = vmatpush1.bf16.msra.mxu0 %v4580_v54  ;;  %v4697_v54 = vld [vmem:[%s5610_s11 + $0x130] ss:$8 sps:$4 sm:$0xff]  }
 0x497   : > { %2985 = vmatprep.subr.bf16.mxu0 %v4588_v56  ;;  %v4663_v56 = vld [vmem:[%s5610_s11 + $0xf4] ss:$8 sps:$4 sm:$0xff]  }
 0x498   : > { %3027 = vmatpush1.bf16.msra.mxu1 %v4583_v57  ;;  %v4702_v57 = vld [vmem:[%s5610_s11 + $0x124] ss:$8 sps:$4 sm:$0xff]  }
 0x499   : > { %3028 = vmatprep.subr.bf16.mxu1 %v4591_v58  ;;  %v4661_v58 = vld [vmem:[%s5610_s11 + $0xf0] ss:$8 sps:$4 sm:$0xff]  }
 0x49a   : > { %2986 = vmatpush1.bf16.msra.mxu0 %v4586_v59  ;;  %v4700_v59 = vld [vmem:[%s5610_s11 + $0x120] ss:$8 sps:$4 sm:$0xff]  }
 0x49b   : > { %2987 = vmatprep.subr.bf16.mxu0 %v4594_v21  ;;  %v4666_v21 = vld [vmem:[%s5610_s11 + $0xe4] ss:$8 sps:$4 sm:$0xff]  }
 0x49c   : > { %3029 = vmatpush2.bf16.msra.mxu1 %v4589_v60  ;;  %v4705_v60 = vld [vmem:[%s5610_s11 + $0x114] ss:$8 sps:$4 sm:$0xff]  }
 0x49d   : > { %3030 = vmatprep.subr.bf16.mxu1 %v4597_v61  ;;  %v4664_v61 = vld [vmem:[%s5610_s11 + $0xe0] ss:$8 sps:$4 sm:$0xff]  }
 0x49e   : > { %2988 = vmatpush2.bf16.msra.mxu0 %v4592_v62  ;;  %v4703_v62 = vld [vmem:[%s5610_s11 + $0x110] ss:$8 sps:$4 sm:$0xff]  }
 0x49f   : > { %2989 = vmatprep.subr.bf16.mxu0 %v4600_v63  ;;  %v4669_v63 = vld [vmem:[%s5610_s11 + $0xd4] ss:$8 sps:$4 sm:$0xff]  }
 0x4a0   : > { %3031 = vmatpush2.bf16.msra.mxu1 %v4595_v0  ;;  %v4708_v0 = vld [vmem:[%s5610_s11 + $0x104] ss:$8 sps:$4 sm:$0xff]  }
 0x4a1   : > { %3032 = vmatprep.subr.bf16.mxu1 %v4603_v10  ;;  %v4667_v10 = vld [vmem:[%s5610_s11 + $0xd0] ss:$8 sps:$4 sm:$0xff]  }
 0x4a2   : > { %2990 = vmatpush2.bf16.msra.mxu0 %v4598_v1  ;;  %v4706_v1 = vld [vmem:[%s5610_s11 + $0x100] ss:$8 sps:$4 sm:$0xff]  }
 0x4a3   : > { %2991 = vmatprep.subr.bf16.mxu0 %v4606_v2  ;;  %v4672_v2 = vld [vmem:[%s5610_s11 + $0xc4] ss:$8 sps:$4 sm:$0xff]  }
 0x4a4   : > { %3033 = vmatpush2.bf16.msra.mxu1 %v4601_v3  ;;  %v4711_v3 = vld [vmem:[%s5610_s11 + $0x1f4] ss:$8 sps:$4 sm:$0xff]  }
 0x4a5   : > { %3034 = vmatprep.subr.bf16.mxu1 %v4609_v4  ;;  %v4670_v4 = vld [vmem:[%s5610_s11 + $0xc0] ss:$8 sps:$4 sm:$0xff]  }
 0x4a6   : > { %2992 = vmatpush2.bf16.msra.mxu0 %v4604_v5  ;;  %v4709_v5 = vld [vmem:[%s5610_s11 + $0x1f0] ss:$8 sps:$4 sm:$0xff]  }
 0x4a7   : > { %2993 = vmatprep.subr.bf16.mxu0 %v4612_v6  ;;  %v4675_v6 = vld [vmem:[%s5610_s11 + $0xb4] ss:$8 sps:$4 sm:$0xff]  }
 0x4a8   : > { %3035 = vmatpush2.bf16.msra.mxu1 %v4607_v7  ;;  %v4714_v7 = vld [vmem:[%s5610_s11 + $0x1e4] ss:$8 sps:$4 sm:$0xff]  }
 0x4a9   : > { %3036 = vmatprep.subr.bf16.mxu1 %v4615_v8  ;;  %v4673_v8 = vld [vmem:[%s5610_s11 + $0xb0] ss:$8 sps:$4 sm:$0xff]  }
 0x4aa   : > { %2994 = vmatpush2.bf16.msra.mxu0 %v4610_v9  ;;  %v4712_v9 = vld [vmem:[%s5610_s11 + $0x1e0] ss:$8 sps:$4 sm:$0xff]  }
 0x4ab   : > { %2995 = vmatprep.subr.bf16.mxu0 %v4618_v11  ;;  %v4678_v11 = vld [vmem:[%s5610_s11 + $0xa4] ss:$8 sps:$4 sm:$0xff]  }
 0x4ac   : > { %3037 = vmatpush2.bf16.msra.mxu1 %v4613_v12  ;;  %v4717_v12 = vld [vmem:[%s5610_s11 + $0x1d4] ss:$8 sps:$4 sm:$0xff]  }
 0x4ad   : > { %3038 = vmatprep.subr.bf16.mxu1 %v4621_v13  ;;  %v4676_v13 = vld [vmem:[%s5610_s11 + $0xa0] ss:$8 sps:$4 sm:$0xff]  }
 0x4ae   : > { %2996 = vmatpush2.bf16.msra.mxu0 %v4616_v14  ;;  %v4715_v14 = vld [vmem:[%s5610_s11 + $0x1d0] ss:$8 sps:$4 sm:$0xff]  }
 0x4af   : > { %2997 = vmatprep.subr.bf16.mxu0 %v4624_v15  ;;  %v4681_v15 = vld [vmem:[%s5610_s11 + $0x94] ss:$8 sps:$4 sm:$0xff]  }
 0x4b0   : > { %3039 = vmatpush2.bf16.msra.mxu1 %v4619_v16  ;;  %v4720_v16 = vld [vmem:[%s5610_s11 + $0x1c4] ss:$8 sps:$4 sm:$0xff]  }
 0x4b1   : > { %3040 = vmatprep.subr.bf16.mxu1 %v4627_v19  ;;  %v4679_v19 = vld [vmem:[%s5610_s11 + $0x90] ss:$8 sps:$4 sm:$0xff]  }
 0x4b2   : > { %2998 = vmatpush2.bf16.msra.mxu0 %v4622_v20  ;;  %v4718_v20 = vld [vmem:[%s5610_s11 + $0x1c0] ss:$8 sps:$4 sm:$0xff]  }
 0x4b3   : > { %2999 = vmatprep.subr.bf16.mxu0 %v4630_v22  ;;  %v4684_v22 = vld [vmem:[%s5610_s11 + $0x84] ss:$8 sps:$4 sm:$0xff]  }
 0x4b4   : > { %3041 = vmatpush2.bf16.msra.mxu1 %v4625_v23  ;;  %v4723_v23 = vld [vmem:[%s5610_s11 + $0x1b4] ss:$8 sps:$4 sm:$0xff]  }
 0x4b5   : > { %3042 = vmatprep.subr.bf16.mxu1 %v4633_v24  ;;  %v4682_v24 = vld [vmem:[%s5610_s11 + $0x80] ss:$8 sps:$4 sm:$0xff]  }
 0x4b6   : > { %3000 = vmatpush2.bf16.msra.mxu0 %v4628_v25  ;;  %v4721_v25 = vld [vmem:[%s5610_s11 + $0x1b0] ss:$8 sps:$4 sm:$0xff]  }
 0x4b7   : > { %3001 = vmatprep.subr.bf16.mxu0 %v4636_v27  ;;  %v4726_v27 = vld [vmem:[%s5610_s11 + $0x1a4] ss:$8 sps:$4 sm:$0xff]  }
 0x4b8   : > { %3043 = vmatpush2.bf16.msra.mxu1 %v4631_v28  ;;  %v4724_v28 = vld [vmem:[%s5610_s11 + $0x1a0] ss:$8 sps:$4 sm:$0xff]  }
 0x4b9   : > { %3498 = vmatprep.subr.bf16.mxu1 %v4687_v40 }
 0x4ba   : > { %3002 = vmatpush2.bf16.msra.mxu0 %v4634_v31  ;;  %v4729_v31 = vld [vmem:[%s5610_s11 + $0x194] ss:$8 sps:$4 sm:$0xff]  }
 0x4bb   : > { %3045 = vmatmul.mubr.bf16.vlgmr.msra.gmra.mxu1 %v5344_v26  ;;  %3457 = vmatprep.subr.bf16.mxu0 %v4639_v32  ;;  %v4643_v26 = vld [vmem:[%s5610_s11 + $0x50] ss:$8 sps:$4 sm:$0xff]  }
 0x4bc   : > { %3499 = vmatpush1.bf16.msra.mxu1 %v4685_v41  ;;  %v4727_v32 = vld [vmem:[%s5610_s11 + $0x190] ss:$8 sps:$4 sm:$0xff]  }
 0x4bd   : > { %3004 = vmatmul.mubr.bf16.vlgmr.msra.gmra.mxu0 %v5347_v30  ;;  %v4648_v30 = vld [vmem:[%s5610_s11 + $0x44] ss:$8 sps:$4 sm:$0xff]   ;;  %3500 = vmatprep.subr.bf16.mxu1 %v4690_v36 }
 0x4be   : > { %3458 = vmatpush1.bf16.msra.mxu0 %v4637_v33  ;;  %v4732_v33 = vld [vmem:[%s5610_s11 + $0x184] ss:$8 sps:$4 sm:$0xff]  }
 0x4bf   : > { %3459 = vmatprep.subr.bf16.mxu0 %v4642_v34  ;;  %v4730_v34 = vld [vmem:[%s5610_s11 + $0x180] ss:$8 sps:$4 sm:$0xff]  }
 0x4c0   : > { %3501 = vmatpush1.bf16.msra.mxu1 %v4688_v43 }
 0x4c1   : > { %3502 = vmatprep.subr.bf16.mxu1 %v4693_v44 }
 0x4c2   : > { %3460 = vmatpush1.bf16.msra.mxu0 %v4640_v35  ;;  %v2227_v35 = vld [vmem:[%s5609_s10] sm:$0xf] }
 0x4c3   : > { %3461 = vmatprep.subr.bf16.mxu0 %v4645_v37  ;;  %v2872_v37 = vrot.slane %v2227_v35, %v5317_v53 }
 0x4c4   : > { %3503 = vmatpush1.bf16.msra.mxu1 %v4691_v18 }
 0x4c5   : > { %3504 = vmatprep.subr.bf16.mxu1 %v4696_v47 }
 0x4c6   : > { %3462 = vmatpush1.bf16.msra.mxu0 %v4643_v26 }
 0x4c7   : > { %3463 = vmatprep.subr.bf16.mxu0 %v4648_v30  ;;  %v2876_v30 = vrot.slane %v2227_v35, %v5323_v55 }
 0x4c8   : > { %3505 = vmatpush1.bf16.msra.mxu1 %v4694_v49 }
 0x4c9   : > { %3506 = vmatprep.subr.bf16.mxu1 %v4699_v51  ;;  %v2883_v51 = vsub.s32 3, %v5196_v17 }
 0x4ca   : > { %3464 = vmatpush1.bf16.msra.mxu0 %v4646_v38 }
 0x4cb   : > { %3465 = vmatprep.subr.bf16.mxu0 %v4651_v29 }
 0x4cc   : > { %3507 = vmatpush1.bf16.msra.mxu1 %v4697_v54 }
 0x4cd   : > { %3508 = vmatprep.subr.bf16.mxu1 %v4702_v57 }
 0x4ce   : > { %3466 = vmatpush1.bf16.msra.mxu0 %v4649_v42 }
 0x4cf   : > { %3467 = vmatprep.subr.bf16.mxu0 %v4654_v39 }
 0x4d0   : > { %3509 = vmatpush1.bf16.msra.mxu1 %v4700_v59 }
 0x4d1   : > { %3510 = vmatprep.subr.bf16.mxu1 %v4705_v60 }
 0x4d2   : > { %3468 = vmatpush1.bf16.msra.mxu0 %v4652_v45 }
 0x4d3   : > { %3469 = vmatprep.subr.bf16.mxu0 %v4657_v46 }
 0x4d4   : > { %3511 = vmatpush1.bf16.msra.mxu1 %v4703_v62 }
 0x4d5   : > { %3512 = vmatprep.subr.bf16.mxu1 %v4708_v0 }
 0x4d6   : > { %3470 = vmatpush1.bf16.msra.mxu0 %v4655_v48 }
 0x4d7   : > { %3471 = vmatprep.subr.bf16.mxu0 %v4660_v50  ;;  %v2879_v50 = vsub.s32 2, %v5196_v17  ;;  %v4733_v17 = vld [vmem:[#allocation14 + $0x78] sm:$0xff]  }
 0x4d8   : > { %3513 = vmatpush1.bf16.msra.mxu1 %v4706_v1 }
 0x4d9   : > { %3514 = vmatprep.subr.bf16.mxu1 %v4711_v3 }
 0x4da   : > { %3472 = vmatpush1.bf16.msra.mxu0 %v4658_v52  ;;  %v2880_v52 = vrot.slane %v2227_v35, %v2879_v50 }
 0x4db   : > { %3473 = vmatprep.subr.bf16.mxu0 %v4663_v56  ;;  %v2884_v56 = vrot.slane %v2227_v35, %v2883_v51 }
 0x4dc   : > { %3515 = vmatpush2.bf16.msra.mxu1 %v4709_v5 }
 0x4dd   : > { %3516 = vmatprep.subr.bf16.mxu1 %v4714_v7  ;;  %v4735_v7 = vld [vmem:[#allocation14 + $0x70] sm:$0xff]  }
 0x4de   : > { %3474 = vmatpush2.bf16.msra.mxu0 %v4661_v58 }
 0x4df   : > { %3475 = vmatprep.subr.bf16.mxu0 %v4666_v21 }
 0x4e0   : > { %3517 = vmatpush2.bf16.msra.mxu1 %v4712_v9  ;;  %v4737_v9 = vld [vmem:[#allocation14 + $0x68] sm:$0xff]  }
 0x4e1   : > { %3518 = vmatprep.subr.bf16.mxu1 %v4717_v12  ;;  %v4739_v12 = vld [vmem:[#allocation14 + $0x60] sm:$0xff]  }
 0x4e2   : > { %3476 = vmatpush2.bf16.msra.mxu0 %v4664_v61 }
 0x4e3   : > { %3477 = vmatprep.subr.bf16.mxu0 %v4669_v63 }
 0x4e4   : > { %3519 = vmatpush2.bf16.msra.mxu1 %v4715_v14  ;;  %v4741_v14 = vld [vmem:[#allocation14 + $0x58] sm:$0xff]  }
 0x4e5   : > { %3520 = vmatprep.subr.bf16.mxu1 %v4720_v16  ;;  %v4743_v16 = vld [vmem:[#allocation14 + $0x50] sm:$0xff]  }
 0x4e6   : > { %3478 = vmatpush2.bf16.msra.mxu0 %v4667_v10 }
 0x4e7   : > { %3479 = vmatprep.subr.bf16.mxu0 %v4672_v2 }
 0x4e8   : > { %3521 = vmatpush2.bf16.msra.mxu1 %v4718_v20  ;;  %v4745_v20 = vld [vmem:[#allocation14 + $0x48] sm:$0xff]  }
 0x4e9   : > { %3522 = vmatprep.subr.bf16.mxu1 %v4723_v23  ;;  %v4747_v23 = vld [vmem:[#allocation14 + $0x40] sm:$0xff]  }
 0x4ea   : > { %3480 = vmatpush2.bf16.msra.mxu0 %v4670_v4 }
 0x4eb   : > { %3481 = vmatprep.subr.bf16.mxu0 %v4675_v6  ;;  %v4734_v6 = vld [vmem:[#allocation14 + $0x38] sm:$0xff]  }
 0x4ec   : > { %3523 = vmatpush2.bf16.msra.mxu1 %v4721_v25 }
 0x4ed   : > { %3524 = vmatprep.subr.bf16.mxu1 %v4726_v27 }
 0x4ee   : > { %3482 = vmatpush2.bf16.msra.mxu0 %v4673_v8  ;;  %v4736_v8 = vld [vmem:[#allocation14 + $0x30] sm:$0xff]  }
 0x4ef   : > { %3483 = vmatprep.subr.bf16.mxu0 %v4678_v11  ;;  %v4738_v11 = vld [vmem:[#allocation14 + $0x28] sm:$0xff]  }
 0x4f0   : > { %3525 = vmatpush2.bf16.msra.mxu1 %v4724_v28 }
 0x4f1   : > { %3526 = vmatprep.subr.bf16.mxu1 %v4729_v31 }
 0x4f2   : > { %3484 = vmatpush2.bf16.msra.mxu0 %v4676_v13  ;;  %v4740_v13 = vld [vmem:[#allocation14 + $0x20] sm:$0xff]  }
 0x4f3   : > { %3485 = vmatprep.subr.bf16.mxu0 %v4681_v15  ;;  %v4742_v15 = vld [vmem:[#allocation14 + $0x18] sm:$0xff]  }
 0x4f4   : > { %3527 = vmatpush2.bf16.msra.mxu1 %v4727_v32  ;;  %v3125_v32 = vld [vmem:[%s5611_s12] sm:$0x3] }
 0x4f5   : > { %3528 = vmatprep.subr.bf16.mxu1 %v4732_v33  ;;  %v3450_v33 = vrot.slane %v3125_v32, %v5317_v53 }
 0x4f6   : > { %3486 = vmatpush2.bf16.msra.mxu0 %v4679_v19  ;;  %v4744_v19 = vld [vmem:[#allocation14 + $0x10] sm:$0xff]  }
 0x4f7   : > { %3487 = vmatprep.subr.bf16.mxu0 %v4684_v22  ;;  %v4746_v22 = vld [vmem:[#allocation14 + $0x8] sm:$0xff]  }
 0x4f8   : > { %3529 = vmatpush2.bf16.msra.mxu1 %v4730_v34  ;;  %v3454_v34 = vrot.slane %v3125_v32, %v5323_v55  ;;  %v3575_v55 = vld [vmem:[%s5613_s14] sm:$0x1] }
 0x4fa   : > { %3488 = vmatpush2.bf16.msra.mxu0 %v4682_v24  ;;  %v4748_v24 = vld [vmem:[#allocation14] sm:$0xff]  }
 0x4fb   : > { %4165 = vmatprep.subr.bf16.mxu0 %v4733_v17 }
 0x53b   : > { %v2964_v26 = vpop.f32.mrf.mxu1 }
 0x53d   : > { %v2923_v38 = vpop.f32.mrf.mxu0  ;;  %v2966_v29 = vpop.f32.mrf.mxu1 }
 0x53e   : > { %v2924_v40 = vadd.f32 %v2923_v38, %v2872_v37 }
 0x53f   : > { %v2925_v41 = vpop.f32.mrf.mxu0  ;;  %v2968_v36 = vpop.f32.mrf.mxu1 }
 0x540   : > { %v2965_v42 = vadd.f32 %v2964_v26, %v2924_v40  ;;  %v2926_v43 = vadd.f32 %v2925_v41, %v2876_v30 }
 0x541   : > { %v2927_v39 = vpop.f32.mrf.mxu0  ;;  %v2969_v44 = vpop.f32.mrf.mxu1 }
 0x542   : > { %v2967_v45 = vadd.f32 %v2966_v29, %v2926_v43  ;;  %v3053_v18 = vmax.f32 %v2965_v42, 0.0 }
 0x543   : > { %v2928_v46 = vpop.f32.mrf.mxu0 }
 0x544   : > { %v3054_v47 = vmax.f32 %v2967_v45, 0.0  ;;  %v3057_v49 = vpack.c.bf16 %v3053_v18, %v3053_v18 }
 0x546   : > { %v3058_v48 = vpack.c.bf16 %v3054_v47, %v3054_v47 }
 0x548   : > { %3489 = vmatprep.mubr.bf16.mxu0 %v3058_v48 }
 0x549   : > { %3490 = vmatmul.mubr.bf16.vlgmr.msra.gmra.mxu0 %v3057_v49 }
 0x54a   : > { %4166 = vmatpush3.bf16.msra.mxu0 %v4734_v6 }
 0x54b   : > { %4167 = vmatprep.subr.bf16.mxu0 %v4735_v7 }
 0x54e   : > { %4168 = vmatpush3.bf16.msra.mxu0 %v4736_v8 }
 0x54f   : > { %4169 = vmatprep.subr.bf16.mxu0 %v4737_v9 }
 0x552   : > { %4170 = vmatpush3.bf16.msra.mxu0 %v4738_v11 }
 0x553   : > { %4171 = vmatprep.subr.bf16.mxu0 %v4739_v12 }
 0x556   : > { %4172 = vmatpush3.bf16.msra.mxu0 %v4740_v13 }
 0x557   : > { %4173 = vmatprep.subr.bf16.mxu0 %v4741_v14 }
 0x55a   : > { %4174 = vmatpush3.bf16.msra.mxu0 %v4742_v15 }
 0x55b   : > { %4175 = vmatprep.subr.bf16.mxu0 %v4743_v16 }
 0x55e   : > { %4176 = vmatpush3.bf16.msra.mxu0 %v4744_v19 }
 0x55f   : > { %4177 = vmatprep.subr.bf16.mxu0 %v4745_v20 }
 0x562   : > { %4178 = vmatpush3.bf16.msra.mxu0 %v4746_v22 }
 0x563   : > { %4179 = vmatprep.subr.bf16.mxu0 %v4747_v23 }
 0x566   : > { %4180 = vmatpush3.bf16.msra.mxu0 %v4748_v24 }
 0x57b   : > { %v3046_v54 = vpop.f32.mrf.mxu1 }
 0x57d   : > { %v3005_v57 = vpop.f32.mrf.mxu0  ;;  %v3048_v58 = vpop.f32.mrf.mxu1 }
 0x57e   : > { %v3006_v59 = vadd.f32 %v3005_v57, %v2880_v52 }
 0x57f   : > { %v3007_v21 = vpop.f32.mrf.mxu0  ;;  %v3050_v60 = vpop.f32.mrf.mxu1 }
 0x580   : > { %v3047_v61 = vadd.f32 %v3046_v54, %v3006_v59  ;;  %v3008_v62 = vadd.f32 %v3007_v21, %v2884_v56 }
 0x581   : > { %v3009_v63 = vpop.f32.mrf.mxu0  ;;  %v3051_v0 = vpop.f32.mrf.mxu1 }
 0x582   : > { %v3049_v10 = vadd.f32 %v3048_v58, %v3008_v62  ;;  %v3055_v1 = vmax.f32 %v3047_v61, 0.0 }
 0x583   : > { %v3010_v2 = vpop.f32.mrf.mxu0 }
 0x584   : > { %v3056_v3 = vmax.f32 %v3049_v10, 0.0  ;;  %v3059_v5 = vpack.c.bf16 %v3055_v1, %v3055_v1 }
 0x586   : > { %v3060_v4 = vpack.c.bf16 %v3056_v3, %v3056_v3 }
 0x588   : > { %3530 = vmatprep.mubr.bf16.mxu1 %v3060_v4 }
 0x589   : > { %3531 = vmatmul.mubr.bf16.vlgmr.msra.gmra.mxu1 %v3059_v5 }
 0x609   : > { %v3491_v25 = vpop.f32.mrf.mxu0 }
 0x60a   : > { %v3492_v35 = vadd.f32 %v3491_v25, %v3450_v33 }
 0x60b   : > { %v3493_v27 = vpop.f32.mrf.mxu0 }
 0x60c   : > { %v3494_v26 = vadd.f32 %v3493_v27, %v3454_v34 }
 0x60d   : > { %v3495_v28 = vpop.f32.mrf.mxu0 }
 0x60f   : > { %v3496_v31 = vpop.f32.mrf.mxu0 }
 0x649   : > { %v3532_v37 = vpop.f32.mrf.mxu1 }
 0x64a   : > { %v3533_v30 = vadd.f32 %v3532_v37, %v3492_v35 }
 0x64b   : > { %v3534_v38 = vpop.f32.mrf.mxu1 }
 0x64c   : > { %v3535_v29 = vadd.f32 %v3534_v38, %v3494_v26  ;;  %v3539_v40 = vmax.f32 %v3533_v30, 0.0 }
 0x64d   : > { %v3536_v41 = vpop.f32.mrf.mxu1 }
 0x64e   : > { %v3540_v36 = vmax.f32 %v3535_v29, 0.0  ;;  %v3541_v39 = vpack.c.bf16 %v3539_v40, %v3539_v40 }
 0x64f   : > { %v3537_v42 = vpop.f32.mrf.mxu1 }
 0x650   : > { %v3542_v43 = vpack.c.bf16 %v3540_v36, %v3540_v36 }
 0x652   : > { %3704 = vmatprep.mubr.bf16.mxu0 %v3542_v43 }
 0x653   : > { %3705 = vmatmul.mubr.bf16.vlgmr.msra.gmra.mxu0 %v3541_v39 }
 0x713   : > { %v4181_v53 = vpop.f32.mrf.mxu0 }
 0x715   : > { %v4182_v44 = vpop.f32.mrf.mxu0 }
 0x716   : > { %v4183_v45 = vadd.f32 %v4182_v44, %v4181_v53 }
 0x717   : > { %v4184_v18 = vpop.f32.mrf.mxu0 }
 0x718   : > { %v3707_v46 = vadd.f32 %v4183_v45, %v3575_v55 }
 0x719   : > { %v4185_v47 = vpop.f32.mrf.mxu0 }
 0x71a   : > { %3712 = vst [vmem:[%s559_s26] sm:$0x1] %v3707_v46 }
 0x71b   : > { %4892 = shalt.err (!%p4889_p13)
}
 0x71c   : > { %s4893_s29 = scalar_lea.hbm %s5564_s15, 16  ;;  %s4897_s26 = scalar_lea.hbm %s5651_s23, 32 }
 0x71d   : > { %p4894_p11 = scmp.ne.s32.totalorder %s5564_s15, %s4893_s29  ;;  %p4898_p3 = scmp.lt.s32.totalorder %s5564_s15, %s5651_s23 }
 0x71e   : > { %p4899_p12 = scmp.lt.s32.totalorder %s4897_s26, %s4893_s29 }
 0x71f   : > { %p4895_p1 = pnand %p4894_p11, %p5087_p5 }
 0x720   : > { %p4900_p10 = por %p4899_p12, %p4898_p3 }
 0x721   : > { %p4896_p0 = pneg %p4895_p1 }
 0x723   : > { %p4901_p2 = pnand %p4900_p10, %p4896_p0 }
 0x725   : > { %4904 = shalt.err (!%p4901_p2)
}
 0x726   : > { %4274 = dma.vmem_to_hbm [thread:$0]  (%p5087_p5), %s3727_s16, 16, %s5564_s15, %s3714_s18  }
 0x727 PF: > { %s5652_s25 = sld [smem:[#allocation22_spill]] }
 0x728   : > { %s5653_s22 = sld [smem:[#allocation20_spill]] }
 0x729   : > { %s5654_s20 = sld [smem:[#allocation26_spill]] }
 0x72d   : > { %p4306_p4 = scmp.ge.s32.totalorder %s5652_s25, 2 }
 0x72e   : > { %s3738_s17 = sand.u32 1, %s5653_s22  }
 0x72f   : > { %p5655_p6 = scmp.ne.s32.totalorder %s5654_s20, 0  ;;  %s3739_s24 = scalar_lea.sflag [#allocation8], %s3738_s17 }
 0x731   : > { %p4293_p9 = pnand %p4306_p4, %p5655_p6 }
 0x733   : > { %p4294_p7 = pneg %p4293_p9 }
 0x735   : > { %4934 = dma.done.wait (%p4294_p7), %s3739_s24, 16  }
 0x736   : > { %4936 = vsyncadd (%p4294_p7), %s3739_s24, 4294967280  ;;  %s5656_s21 = sld [smem:[#allocation23_spill]]  ;;  %s5659_s18 = smov %s4943_s19 }
 0x737   : > { %s5657_s29 = sld [smem:[#allocation21_spill]] }
 0x738   : > { %s5658_s20 = sld [smem:[#allocation24_spill]] }
 0x73c   : > { %p28_p8 = scmp.ge.s32.totalorder %s5656_s21, 4  }
 0x73d   : > { %s5660_s19 = smov %s5657_s29 }
 0x73e   :  { %30 = sbr.rel (!%p28_p8) target bundleno = 8 (0x8), region = 142 }
 0x743   :  { %3743 = vsyncpa [#allocation7], 1 }
 0x744   :  { %3745 = vsyncpa [#allocation7 + $0x1], 1 }
 0x745   :  { %3746 = vsyncpa [#allocation10], 1 }
 0x746   :  { %3747 = vsyncpa [#allocation13], 1 }
 0x747   :  { %3748 = vsyncpa [#allocation8], 1 }
 0x748   :  { %3750 = vsyncpa [#allocation8 + $0x1], 1 }

</bundles_post_ra>
